<compile_context>
chip_gen: v7x
topology: tpu7x:2x2x1
jax: 0.10.0
libtpu: 0.0.40
codegen_flags: <defaults>
</compile_context>

<pallas_src>
import functools
import math

import jax
import jax.numpy as jnp
from jax.experimental import pallas as pl
from jax.experimental.pallas import tpu as pltpu


def _round_up(x, m):
    return (x + m - 1) // m * m


# ----------------------------------------------------------------------------
# Pallas kernel 1: tiled matmul (bf16 MXU) + fp32 accumulator + bias (+ ReLU)
# ----------------------------------------------------------------------------
def _mm_bias_kernel(a_ref, b_ref, bias_ref, o_ref, acc_ref, *, relu):
    k = pl.program_id(2)

    @pl.when(k == 0)
    def _():
        acc_ref[...] = jnp.zeros_like(acc_ref)

    acc_ref[...] += jnp.dot(a_ref[...], b_ref[...],
                            preferred_element_type=jnp.float32)

    @pl.when(k == pl.num_programs(2) - 1)
    def _():
        out = acc_ref[...] + bias_ref[...]
        if relu:
            out = jnp.maximum(out, 0.0)
        o_ref[...] = out.astype(o_ref.dtype)


def matmul_bias(a, b, bias, relu=False):
    """a: (M, K), b: (K, N), bias: (N,) -> (M, N) float32.

    Operands are cast to bf16 (fp32 MXU accumulation); K and N are zero-padded
    to multiples of 128 so outputs are lane-dense (no masked partial stores).
    Tiles are capped at (256, 256, 512) so double-buffered blocks stay far
    below the v7x 32 MiB scoped-VMEM default.
    """
    M, K = a.shape
    K2, N = b.shape
    assert K == K2
    Kp = _round_up(K, 128)
    Np = _round_up(N, 128)
    tk = 512 if Kp % 512 == 0 else (256 if Kp % 256 == 0 else 128)
    tn = 256 if Np % 256 == 0 else 128
    tm = 256 if M >= 256 else _round_up(M, 8)
    Mp = _round_up(M, tm)

    a_p = jnp.pad(a, ((0, Mp - M), (0, Kp - K))).astype(jnp.bfloat16)
    b_p = jnp.pad(b, ((0, Kp - K), (0, Np - N))).astype(jnp.bfloat16)
    bias_p = jnp.pad(bias, (0, Np - N)).reshape(1, Np).astype(jnp.float32)

    grid = (Mp // tm, Np // tn, Kp // tk)
    out = pl.pallas_call(
        functools.partial(_mm_bias_kernel, relu=relu),
        out_shape=jax.ShapeDtypeStruct((Mp, Np), jnp.float32),
        grid_spec=pltpu.PrefetchScalarGridSpec(
            num_scalar_prefetch=0,
            grid=grid,
            in_specs=[
                pl.BlockSpec((tm, tk), lambda i, j, k: (i, k)),
                pl.BlockSpec((tk, tn), lambda i, j, k: (k, j)),
                pl.BlockSpec((1, tn), lambda i, j, k: (0, j)),
            ],
            out_specs=pl.BlockSpec((tm, tn), lambda i, j, k: (i, j)),
            scratch_shapes=[pltpu.VMEM((tm, tn), jnp.float32)],
        ),
        compiler_params=pltpu.CompilerParams(
            dimension_semantics=("parallel", "parallel", "arbitrary")),
    )(a_p, b_p, bias_p)
    return out[:M, :N]


# ----------------------------------------------------------------------------
# Pallas kernel 2: loss reductions (gridded SSE accumulator + KL sum)
# ----------------------------------------------------------------------------
def _loss_kernel(recon_ref, xn_ref, mu_ref, lv_ref, sq_ref, kl_ref, acc_ref):
    i = pl.program_id(0)

    @pl.when(i == 0)
    def _():
        acc_ref[...] = jnp.zeros_like(acc_ref)

    d = recon_ref[...] - xn_ref[...]
    acc_ref[...] += jnp.sum(d * d, keepdims=True)

    @pl.when(i == pl.num_programs(0) - 1)
    def _():
        sq_ref[...] = acc_ref[...]
        mu = mu_ref[...]
        lv = lv_ref[...]
        kl_ref[...] = 0.5 * jnp.sum(mu * mu + jnp.exp(lv) - 1.0 - lv,
                                    keepdims=True)


def loss_sums(recon, xn, mu, logvar):
    """Returns (sum((recon-xn)^2), sum KL(N(mu,exp(logvar)) || N(0,1)))."""
    LANE = 128
    total = recon.size
    R = -(-total // LANE)
    pad = R * LANE - total
    rf = jnp.pad(recon.reshape(-1), (0, pad)).reshape(R, LANE)
    xf = jnp.pad(xn.reshape(-1), (0, pad)).reshape(R, LANE)
    tr = 512 if R > 512 else _round_up(R, 8)
    Rp = _round_up(R, tr)
    if Rp != R:
        rf = jnp.pad(rf, ((0, Rp - R), (0, 0)))
        xf = jnp.pad(xf, ((0, Rp - R), (0, 0)))

    sq, kl = pl.pallas_call(
        _loss_kernel,
        out_shape=(jax.ShapeDtypeStruct((1, 1), jnp.float32),
                   jax.ShapeDtypeStruct((1, 1), jnp.float32)),
        grid_spec=pltpu.PrefetchScalarGridSpec(
            num_scalar_prefetch=0,
            grid=(Rp // tr,),
            in_specs=[
                pl.BlockSpec((tr, LANE), lambda i: (i, 0)),
                pl.BlockSpec((tr, LANE), lambda i: (i, 0)),
                pl.BlockSpec(mu.shape, lambda i: (0, 0)),
                pl.BlockSpec(logvar.shape, lambda i: (0, 0)),
            ],
            out_specs=(pl.BlockSpec((1, 1), lambda i: (0, 0)),
                       pl.BlockSpec((1, 1), lambda i: (0, 0))),
            scratch_shapes=[pltpu.VMEM((1, 1), jnp.float32)],
        ),
        compiler_params=pltpu.CompilerParams(dimension_semantics=("arbitrary",)),
    )(rf.astype(jnp.float32), xf.astype(jnp.float32),
      mu.astype(jnp.float32), logvar.astype(jnp.float32))
    return sq[0, 0], kl[0, 0]


# ----------------------------------------------------------------------------
# Conv / ConvTranspose glue (NHWC, transpose-free im2col) + Pallas matmul
# ----------------------------------------------------------------------------
# TODO(synk): fold the kh*kw tap loop into the matmul kernel itself (input tile
# resident in VMEM) to remove the remaining im2col HBM expansion entirely.
def conv2d(x, wmat, bias, *, kh, kw, stride=1, pad=0, relu=False):
    """x: (B, H, W, C) NHWC; wmat: (kh*kw*C, O) tap-major; bias: (O,)."""
    B, H, W, C = x.shape
    O = wmat.shape[1]
    xp = jnp.pad(x, ((0, 0), (pad, pad), (pad, pad), (0, 0)))
    Ho = (H + 2 * pad - kh) // stride + 1
    Wo = (W + 2 * pad - kw) // stride + 1
    cols = [xp[:, i:i + stride * Ho:stride, j:j + stride * Wo:stride, :]
            for i in range(kh) for j in range(kw)]
    pat = cols[0] if len(cols) == 1 else jnp.concatenate(cols, axis=-1)
    pat = pat.reshape(B * Ho * Wo, kh * kw * C)          # no transpose needed (NHWC)
    out = matmul_bias(pat, wmat, bias, relu=relu)
    return out.reshape(B, Ho, Wo, O)


def conv_transpose2d(x, phase_mats, bias, relu=False):
    """ConvTranspose2d(k=4, stride=2, pad=1) via stride-phase decomposition.

    Each output phase (rh, rw) is a stride-1 conv with a 2x2 sub-kernel of the
    original 4x4 kernel (no zero-dilation -> no wasted FLOPs / im2col rows);
    phase outputs are interleaved with reshapes only (no transposes).
    x: (B, H, W, Cin); phase_mats: (2, 2, 4*Cin, Cout); bias: (Cout,)
    """
    B, H, W, C = x.shape
    O = phase_mats.shape[-1]
    xp = jnp.pad(x, ((0, 0), (1, 1), (1, 1), (0, 0)))
    phase_out = [[None, None], [None, None]]
    for rh in (0, 1):
        for rw in (0, 1):
            cols = [xp[:, rh + dh:rh + dh + H, rw + dw:rw + dw + W, :]
                    for dh in (0, 1) for dw in (0, 1)]
            pat = jnp.concatenate(cols, axis=-1).reshape(B * H * W, 4 * C)
            out = matmul_bias(pat, phase_mats[rh, rw], bias, relu=relu)
            phase_out[rh][rw] = out.reshape(B, H, W, O)
    row0 = jnp.stack(phase_out[0], axis=3).reshape(B, H, 2 * W, O)
    row1 = jnp.stack(phase_out[1], axis=3).reshape(B, H, 2 * W, O)
    return jnp.stack([row0, row1], axis=2).reshape(B, 2 * H, 2 * W, O)


def res_block(x, p):
    # x + (ReLU -> Conv3x3 -> ReLU -> Conv1x1)(x)
    (w1, b1), (w2, b2) = p
    h = jnp.maximum(x, 0.0)
    h = conv2d(h, w1, b1, kh=3, kw=3, stride=1, pad=1, relu=True)
    h = conv2d(h, w2, b2, kh=1, kw=1, stride=1, pad=0, relu=False)
    return x + h


# ----------------------------------------------------------------------------
# Parameter init (matmul-ready / pre-transposed weight layouts)
# ----------------------------------------------------------------------------
def _conv_param(key, out_c, in_c, k):
    k1, k2 = jax.random.split(key)
    fan_out = out_c * k * k                               # kaiming_normal_(fan_out)
    w = math.sqrt(2.0 / fan_out) * jax.random.normal(k1, (out_c, in_c, k, k), jnp.float32)
    bound = 1.0 / math.sqrt(in_c * k * k)
    b = jax.random.uniform(k2, (out_c,), jnp.float32, -bound, bound)
    # (O, C, kh, kw) -> matmul-ready (kh*kw*C, O), tap-major to match the NHWC patch order
    wm = jnp.transpose(w, (2, 3, 1, 0)).reshape(k * k * in_c, out_c)
    return wm, b


def _convT_param(key, in_c, out_c, k=4):
    k1, k2 = jax.random.split(key)
    fan_in = in_c * k * k
    bound = 1.0 / math.sqrt(fan_in)
    w = jax.random.uniform(k1, (in_c, out_c, k, k), jnp.float32, -bound, bound)
    b = jax.random.uniform(k2, (out_c,), jnp.float32, -bound, bound)
    # stride-2 / pad-1 phase decomposition: equivalent-conv weight is the
    # flipped/transposed kernel; phase (rh, rw) uses kernel rows/cols
    # {0,2} (rh=0) or {1,3} (rh=1).
    wflip = w[:, :, ::-1, ::-1]                           # [cin, cout, i, j]
    sel = {0: (0, 2), 1: (1, 3)}
    rows = []
    for rh in (0, 1):
        cols = []
        for rw in (0, 1):
            taps = [wflip[:, :, sel[rh][dh], sel[rw][dw]]  # (Cin, Cout)
                    for dh in (0, 1) for dw in (0, 1)]
            cols.append(jnp.stack(taps, axis=0).reshape(4 * in_c, out_c))
        rows.append(jnp.stack(cols, axis=0))
    return jnp.stack(rows, axis=0), b                     # (2, 2, 4*Cin, Cout)


def _linear_param(key, in_f, out_f):
    k1, k2 = jax.random.split(key)
    bound = 1.0 / math.sqrt(in_f)
    w = jax.random.uniform(k1, (out_f, in_f), jnp.float32, -bound, bound)
    b = jax.random.uniform(k2, (out_f,), jnp.float32, -bound, bound)
    return w.T, b                                          # matmul-ready (in, out)


def init_params(key, *, n_hidden, res_hidden, embed_dim, image_width):
    hw = image_width // 4
    ks = jax.random.split(key, 18)
    fc_mu_w, fc_mu_b = _linear_param(ks[8], n_hidden * hw * hw, embed_dim)
    fc_lv_w, fc_lv_b = _linear_param(ks[9], n_hidden * hw * hw, embed_dim)
    return {
        # encoder
        "e_conv1": _conv_param(ks[0], n_hidden // 2, 3, 4),
        "e_conv2": _conv_param(ks[1], n_hidden, n_hidden // 2, 4),
        "e_conv3": _conv_param(ks[2], n_hidden, n_hidden, 3),
        "e_res1": (_conv_param(ks[3], res_hidden, n_hidden, 3),
                   _conv_param(ks[4], n_hidden, res_hidden, 1)),
        "e_res2": (_conv_param(ks[5], res_hidden, n_hidden, 3),
                   _conv_param(ks[6], n_hidden, res_hidden, 1)),
        "e_conv4": _conv_param(ks[7], n_hidden, n_hidden, 1),
        # fc_mu / fc_logvar fused along N -> one matmul, slice afterwards
        "fc_mulogvar": (jnp.concatenate([fc_mu_w, fc_lv_w], axis=1),
                        jnp.concatenate([fc_mu_b, fc_lv_b], axis=0)),
        # decoder
        "dec_input": _linear_param(ks[10], embed_dim, n_hidden * hw * hw),
        "d_conv1": _conv_param(ks[11], n_hidden, n_hidden, 3),
        "d_res1": (_conv_param(ks[12], res_hidden, n_hidden, 3),
                   _conv_param(ks[13], n_hidden, res_hidden, 1)),
        "d_res2": (_conv_param(ks[14], res_hidden, n_hidden, 3),
                   _conv_param(ks[15], n_hidden, res_hidden, 1)),
        "d_convT1": _convT_param(ks[16], n_hidden, n_hidden // 2, 4),
        "d_convT2": _convT_param(ks[17], n_hidden // 2, 3, 4),
    }


# ----------------------------------------------------------------------------
# VanillaVAE forward (loss_type='mse' i.e. Gaussian likelihood, fixed scale)
# ----------------------------------------------------------------------------
def vanilla_vae_forward(params, x, eps, *, n_hidden, data_variance):
    B, C, H, W = x.shape
    xn = jnp.transpose(x / 255.0 - 0.5, (0, 2, 3, 1))   # [0,255]->[-0.5,0.5], NCHW->NHWC once

    # ---- encoder ----
    h = conv2d(xn, *params["e_conv1"], kh=4, kw=4, stride=2, pad=1, relu=True)
    h = conv2d(h, *params["e_conv2"], kh=4, kw=4, stride=2, pad=1, relu=True)
    h = conv2d(h, *params["e_conv3"], kh=3, kw=3, stride=1, pad=1, relu=False)
    h = res_block(h, params["e_res1"])
    h = res_block(h, params["e_res2"])
    h = jnp.maximum(h, 0.0)
    h = conv2d(h, *params["e_conv4"], kh=1, kw=1, stride=1, pad=0, relu=True)
    # NHWC flatten is a fixed feature permutation of the PyTorch NCHW flatten;
    # equivalent under the i.i.d.-initialized fc weights.
    hflat = h.reshape(B, -1)
    mulv = matmul_bias(hflat, *params["fc_mulogvar"])    # fused fc_mu + fc_logvar
    E = mulv.shape[1] // 2
    mu, logvar = mulv[:, :E], mulv[:, E:]

    # ---- reparameterize: z = mu + std * eps ----
    z = mu + jnp.exp(0.5 * logvar) * eps

    # ---- decoder ----
    d = matmul_bias(z, *params["dec_input"])
    hw = W // 4
    d = d.reshape(B, hw, hw, n_hidden)                   # NHWC (feature-permuted, see above)
    d = conv2d(d, *params["d_conv1"], kh=3, kw=3, stride=1, pad=1, relu=False)
    d = res_block(d, params["d_res1"])
    d = res_block(d, params["d_res2"])
    d = jnp.maximum(d, 0.0)
    d = conv_transpose2d(d, *params["d_convT1"], relu=True)
    recon = conv_transpose2d(d, *params["d_convT2"], relu=False)   # (B, H, W, 3) NHWC

    # ---- losses (reductions in Pallas) ----
    sq, kl = loss_sums(recon, xn, mu, logvar)

    n_pix = C * H * W
    dv = data_variance
    # Reference passes data_variance as the Normal *scale*:
    # Normal(recon, dv).log_prob(xn) = -log(dv) - 0.5*log(2*pi) - (xn-recon)^2/(2*dv^2)
    nll_output = (n_pix * (math.log(dv) + 0.5 * math.log(2.0 * math.pi))
                  + (sq / B) / (2.0 * dv * dv)) / n_pix
    kl_loss = (kl / B) / n_pix
    neg_elbo = nll_output + kl_loss
    recon_loss = sq / (B * n_pix)

    log = {
        "loss": neg_elbo,
        "recon_loss": recon_loss,
        "recon_loss_scaled": recon_loss / dv,
        "nll_output": nll_output,
        "nll_lb": neg_elbo,
        "bits_per_dim": neg_elbo / math.log(2.0),
        "kl_loss": kl_loss,
    }
    return neg_elbo, log


# ----------------------------------------------------------------------------
if __name__ == "__main__":
    # small shapes consistent with the module
    B = 2
    image_width = 16
    n_hidden = 32
    res_hidden = 16
    embed_dim = 16
    data_variance = 0.06327039811675479

    key = jax.random.PRNGKey(0)
    k_param, k_x, k_eps = jax.random.split(key, 3)

    params = init_params(k_param, n_hidden=n_hidden, res_hidden=res_hidden,
                         embed_dim=embed_dim, image_width=image_width)
    x = jax.random.uniform(k_x, (B, 3, image_width, image_width),
                           jnp.float32, 0.0, 255.0)
    eps = jax.random.normal(k_eps, (B, embed_dim), jnp.float32)

    fwd = jax.jit(functools.partial(vanilla_vae_forward,
                                    n_hidden=n_hidden,
                                    data_variance=data_variance))
    loss, log = fwd(params, x, eps)
    jax.block_until_ready(loss)
    for v in log.values():
        jax.block_until_ready(v)

    assert jnp.isfinite(loss), "loss is not finite"
    print("KERNEL_OK")
</pallas_src>

<mosaic_0001>
module attributes {stable_mosaic.version = 11 : i64} {
  func.func @_mm_bias_kernel(%arg0: i32, %arg1: i32, %arg2: i32, %arg3: memref<128x128xbf16, #tpu.memory_space<vmem>>, %arg4: memref<128x128xbf16, #tpu.memory_space<vmem>>, %arg5: memref<1x128xf32, #tpu.memory_space<vmem>>, %arg6: memref<128x128xf32, #tpu.memory_space<vmem>>, %arg7: memref<128x128xf32, #tpu.memory_space<vmem>>) attributes {dimension_semantics = [#tpu.dimension_semantics<parallel>, #tpu.dimension_semantics<parallel>, #tpu.dimension_semantics<arbitrary>], iteration_bounds = array<i64: 1, 1, 1>, scalar_prefetch = 0 : i64, scratch_operands = 1 : i64, tpu.core_type = #tpu.core_type<tc>, window_params = [{transform_indices = @transform_0, window_bounds = array<i64: 128, 128>}, {transform_indices = @transform_1, window_bounds = array<i64: 128, 128>}, {transform_indices = @transform_2, window_bounds = array<i64: 1, 128>}, {transform_indices = @transform_3, window_bounds = array<i64: 128, 128>}]} {
    %c0_i32 = arith.constant 0 : i32
    %0 = arith.cmpi eq, %arg2, %c0_i32 : i32
    %1 = arith.extui %0 : i1 to i32
    %c0_i32_0 = arith.constant 0 : i32
    %2 = arith.cmpi ne, %1, %c0_i32_0 : i32
    scf.if %2 {
      %cst_10 = arith.constant 0.000000e+00 : f32
      %12 = vector.broadcast %cst_10 : f32 to vector<128x128xf32>
      %c0_11 = arith.constant 0 : index
      %c0_12 = arith.constant 0 : index
      %13 = vector.load %arg7[%c0_11, %c0_12] : memref<128x128xf32, #tpu.memory_space<vmem>>, vector<128x128xf32>
      tpu.vector_store %arg7[%c0_11, %c0_12], %12 {strides = array<i32>} : memref<128x128xf32, #tpu.memory_space<vmem>>, vector<128x128xf32>,
    } else {
    }
    %c0 = arith.constant 0 : index
    %c0_1 = arith.constant 0 : index
    %3 = vector.load %arg7[%c0, %c0_1] : memref<128x128xf32, #tpu.memory_space<vmem>>, vector<128x128xf32>
    %c0_2 = arith.constant 0 : index
    %c0_3 = arith.constant 0 : index
    %4 = vector.load %arg3[%c0_2, %c0_3] : memref<128x128xbf16, #tpu.memory_space<vmem>>, vector<128x128xbf16>
    %c0_4 = arith.constant 0 : index
    %c0_5 = arith.constant 0 : index
    %5 = vector.load %arg4[%c0_4, %c0_5] : memref<128x128xbf16, #tpu.memory_space<vmem>>, vector<128x128xbf16>
    %cst = arith.constant dense<0.000000e+00> : vector<128x128xf32>
    %6 = tpu.matmul %4, %5, %cst {dimension_numbers = #tpu.dot_dimension_numbers<[1], [0], [0], [1], [0, 0, 1, 1], [], []>} : vector<128x128xbf16>, vector<128x128xbf16>, vector<128x128xf32> -> vector<128x128xf32>
    %7 = arith.addf %3, %6 : vector<128x128xf32>
    %c0_6 = arith.constant 0 : index
    %c0_7 = arith.constant 0 : index
    %8 = vector.load %arg7[%c0_6, %c0_7] : memref<128x128xf32, #tpu.memory_space<vmem>>, vector<128x128xf32>
    tpu.vector_store %arg7[%c0_6, %c0_7], %7 {strides = array<i32>} : memref<128x128xf32, #tpu.memory_space<vmem>>, vector<128x128xf32>,
    %c0_i32_8 = arith.constant 0 : i32
    %9 = arith.cmpi eq, %arg2, %c0_i32_8 : i32
    %10 = arith.extui %9 : i1 to i32
    %c0_i32_9 = arith.constant 0 : i32
    %11 = arith.cmpi ne, %10, %c0_i32_9 : i32
    scf.if %11 {
      %c0_10 = arith.constant 0 : index
      %c0_11 = arith.constant 0 : index
      %12 = vector.load %arg7[%c0_10, %c0_11] : memref<128x128xf32, #tpu.memory_space<vmem>>, vector<128x128xf32>
      %c0_12 = arith.constant 0 : index
      %c0_13 = arith.constant 0 : index
      %13 = vector.load %arg5[%c0_12, %c0_13] : memref<1x128xf32, #tpu.memory_space<vmem>>, vector<1x128xf32>
      %14 = vector.broadcast %13 : vector<1x128xf32> to vector<128x128xf32>
      %15 = arith.addf %12, %14 : vector<128x128xf32>
      %cst_14 = arith.constant 0.000000e+00 : f32
      %16 = vector.broadcast %cst_14 : f32 to vector<128x128xf32>
      %17 = arith.maximumf %15, %16 : vector<128x128xf32>
      %c0_15 = arith.constant 0 : index
      %c0_16 = arith.constant 0 : index
      %18 = vector.load %arg6[%c0_15, %c0_16] : memref<128x128xf32, #tpu.memory_space<vmem>>, vector<128x128xf32>
      tpu.vector_store %arg6[%c0_15, %c0_16], %17 {strides = array<i32>} : memref<128x128xf32, #tpu.memory_space<vmem>>, vector<128x128xf32>,
    } else {
    }
    return
  }
  func.func @transform_0(%arg0: i32, %arg1: i32, %arg2: i32) -> (i32, i32) {
    %c0_i32 = arith.constant 0 : i32
    return %arg0, %arg2 : i32, i32
  }
  func.func @transform_1(%arg0: i32, %arg1: i32, %arg2: i32) -> (i32, i32) {
    %c0_i32 = arith.constant 0 : i32
    return %arg2, %arg1 : i32, i32
  }
  func.func @transform_2(%arg0: i32, %arg1: i32, %arg2: i32) -> (i32, i32) {
    %c0_i32 = arith.constant 0 : i32
    %c0_i32_0 = arith.constant 0 : i32
    return %c0_i32, %arg1 : i32, i32
  }
  func.func @transform_3(%arg0: i32, %arg1: i32, %arg2: i32) -> (i32, i32) {
    %c0_i32 = arith.constant 0 : i32
    return %arg0, %arg1 : i32, i32
  }
}

module attributes {stable_mosaic.version = 11 : i64} {
  func.func @_mm_bias_kernel(%arg0: i32, %arg1: i32, %arg2: i32, %arg3: memref<32x256xbf16, #tpu.memory_space<vmem>>, %arg4: memref<256x128xbf16, #tpu.memory_space<vmem>>, %arg5: memref<1x128xf32, #tpu.memory_space<vmem>>, %arg6: memref<32x128xf32, #tpu.memory_space<vmem>>, %arg7: memref<32x128xf32, #tpu.memory_space<vmem>>) attributes {dimension_semantics = [#tpu.dimension_semantics<parallel>, #tpu.dimension_semantics<parallel>, #tpu.dimension_semantics<arbitrary>], iteration_bounds = array<i64: 1, 1, 1>, scalar_prefetch = 0 : i64, scratch_operands = 1 : i64, tpu.core_type = #tpu.core_type<tc>, window_params = [{transform_indices = @transform_0, window_bounds = array<i64: 32, 256>}, {transform_indices = @transform_1, window_bounds = array<i64: 256, 128>}, {transform_indices = @transform_2, window_bounds = array<i64: 1, 128>}, {transform_indices = @transform_3, window_bounds = array<i64: 32, 128>}]} {
    %c0_i32 = arith.constant 0 : i32
    %0 = arith.cmpi eq, %arg2, %c0_i32 : i32
    %1 = arith.extui %0 : i1 to i32
    %c0_i32_0 = arith.constant 0 : i32
    %2 = arith.cmpi ne, %1, %c0_i32_0 : i32
    scf.if %2 {
      %cst_10 = arith.constant 0.000000e+00 : f32
      %12 = vector.broadcast %cst_10 : f32 to vector<32x128xf32>
      %c0_11 = arith.constant 0 : index
      %c0_12 = arith.constant 0 : index
      %13 = vector.load %arg7[%c0_11, %c0_12] : memref<32x128xf32, #tpu.memory_space<vmem>>, vector<32x128xf32>
      tpu.vector_store %arg7[%c0_11, %c0_12], %12 {strides = array<i32>} : memref<32x128xf32, #tpu.memory_space<vmem>>, vector<32x128xf32>,
    } else {
    }
    %c0 = arith.constant 0 : index
    %c0_1 = arith.constant 0 : index
    %3 = vector.load %arg7[%c0, %c0_1] : memref<32x128xf32, #tpu.memory_space<vmem>>, vector<32x128xf32>
    %c0_2 = arith.constant 0 : index
    %c0_3 = arith.constant 0 : index
    %4 = vector.load %arg3[%c0_2, %c0_3] : memref<32x256xbf16, #tpu.memory_space<vmem>>, vector<32x256xbf16>
    %c0_4 = arith.constant 0 : index
    %c0_5 = arith.constant 0 : index
    %5 = vector.load %arg4[%c0_4, %c0_5] : memref<256x128xbf16, #tpu.memory_space<vmem>>, vector<256x128xbf16>
    %cst = arith.constant dense<0.000000e+00> : vector<32x128xf32>
    %6 = tpu.matmul %4, %5, %cst {dimension_numbers = #tpu.dot_dimension_numbers<[1], [0], [0], [1], [0, 0, 1, 1], [], []>} : vector<32x256xbf16>, vector<256x128xbf16>, vector<32x128xf32> -> vector<32x128xf32>
    %7 = arith.addf %3, %6 : vector<32x128xf32>
    %c0_6 = arith.constant 0 : index
    %c0_7 = arith.constant 0 : index
    %8 = vector.load %arg7[%c0_6, %c0_7] : memref<32x128xf32, #tpu.memory_space<vmem>>, vector<32x128xf32>
    tpu.vector_store %arg7[%c0_6, %c0_7], %7 {strides = array<i32>} : memref<32x128xf32, #tpu.memory_space<vmem>>, vector<32x128xf32>,
    %c0_i32_8 = arith.constant 0 : i32
    %9 = arith.cmpi eq, %arg2, %c0_i32_8 : i32
    %10 = arith.extui %9 : i1 to i32
    %c0_i32_9 = arith.constant 0 : i32
    %11 = arith.cmpi ne, %10, %c0_i32_9 : i32
    scf.if %11 {
      %c0_10 = arith.constant 0 : index
      %c0_11 = arith.constant 0 : index
      %12 = vector.load %arg7[%c0_10, %c0_11] : memref<32x128xf32, #tpu.memory_space<vmem>>, vector<32x128xf32>
      %c0_12 = arith.constant 0 : index
      %c0_13 = arith.constant 0 : index
      %13 = vector.load %arg5[%c0_12, %c0_13] : memref<1x128xf32, #tpu.memory_space<vmem>>, vector<1x128xf32>
      %14 = vector.broadcast %13 : vector<1x128xf32> to vector<32x128xf32>
      %15 = arith.addf %12, %14 : vector<32x128xf32>
      %cst_14 = arith.constant 0.000000e+00 : f32
      %16 = vector.broadcast %cst_14 : f32 to vector<32x128xf32>
      %17 = arith.maximumf %15, %16 : vector<32x128xf32>
      %c0_15 = arith.constant 0 : index
      %c0_16 = arith.constant 0 : index
      %18 = vector.load %arg6[%c0_15, %c0_16] : memref<32x128xf32, #tpu.memory_space<vmem>>, vector<32x128xf32>
      tpu.vector_store %arg6[%c0_15, %c0_16], %17 {strides = array<i32>} : memref<32x128xf32, #tpu.memory_space<vmem>>, vector<32x128xf32>,
    } else {
    }
    return
  }
  func.func @transform_0(%arg0: i32, %arg1: i32, %arg2: i32) -> (i32, i32) {
    %c0_i32 = arith.constant 0 : i32
    return %arg0, %arg2 : i32, i32
  }
  func.func @transform_1(%arg0: i32, %arg1: i32, %arg2: i32) -> (i32, i32) {
    %c0_i32 = arith.constant 0 : i32
    return %arg2, %arg1 : i32, i32
  }
  func.func @transform_2(%arg0: i32, %arg1: i32, %arg2: i32) -> (i32, i32) {
    %c0_i32 = arith.constant 0 : i32
    %c0_i32_0 = arith.constant 0 : i32
    return %c0_i32, %arg1 : i32, i32
  }
  func.func @transform_3(%arg0: i32, %arg1: i32, %arg2: i32) -> (i32, i32) {
    %c0_i32 = arith.constant 0 : i32
    return %arg0, %arg1 : i32, i32
  }
}

module attributes {stable_mosaic.version = 11 : i64} {
  func.func @_mm_bias_kernel(%arg0: i32, %arg1: i32, %arg2: i32, %arg3: memref<32x128xbf16, #tpu.memory_space<vmem>>, %arg4: memref<128x128xbf16, #tpu.memory_space<vmem>>, %arg5: memref<1x128xf32, #tpu.memory_space<vmem>>, %arg6: memref<32x128xf32, #tpu.memory_space<vmem>>, %arg7: memref<32x128xf32, #tpu.memory_space<vmem>>) attributes {dimension_semantics = [#tpu.dimension_semantics<parallel>, #tpu.dimension_semantics<parallel>, #tpu.dimension_semantics<arbitrary>], iteration_bounds = array<i64: 1, 1, 3>, scalar_prefetch = 0 : i64, scratch_operands = 1 : i64, tpu.core_type = #tpu.core_type<tc>, window_params = [{transform_indices = @transform_0, window_bounds = array<i64: 32, 128>}, {transform_indices = @transform_1, window_bounds = array<i64: 128, 128>}, {transform_indices = @transform_2, window_bounds = array<i64: 1, 128>}, {transform_indices = @transform_3, window_bounds = array<i64: 32, 128>}]} {
    %c0_i32 = arith.constant 0 : i32
    %0 = arith.cmpi eq, %arg2, %c0_i32 : i32
    %1 = arith.extui %0 : i1 to i32
    %c0_i32_0 = arith.constant 0 : i32
    %2 = arith.cmpi ne, %1, %c0_i32_0 : i32
    scf.if %2 {
      %cst_9 = arith.constant 0.000000e+00 : f32
      %12 = vector.broadcast %cst_9 : f32 to vector<32x128xf32>
      %c0_10 = arith.constant 0 : index
      %c0_11 = arith.constant 0 : index
      %13 = vector.load %arg7[%c0_10, %c0_11] : memref<32x128xf32, #tpu.memory_space<vmem>>, vector<32x128xf32>
      tpu.vector_store %arg7[%c0_10, %c0_11], %12 {strides = array<i32>} : memref<32x128xf32, #tpu.memory_space<vmem>>, vector<32x128xf32>,
    } else {
    }
    %c0 = arith.constant 0 : index
    %c0_1 = arith.constant 0 : index
    %3 = vector.load %arg7[%c0, %c0_1] : memref<32x128xf32, #tpu.memory_space<vmem>>, vector<32x128xf32>
    %c0_2 = arith.constant 0 : index
    %c0_3 = arith.constant 0 : index
    %4 = vector.load %arg3[%c0_2, %c0_3] : memref<32x128xbf16, #tpu.memory_space<vmem>>, vector<32x128xbf16>
    %c0_4 = arith.constant 0 : index
    %c0_5 = arith.constant 0 : index
    %5 = vector.load %arg4[%c0_4, %c0_5] : memref<128x128xbf16, #tpu.memory_space<vmem>>, vector<128x128xbf16>
    %cst = arith.constant dense<0.000000e+00> : vector<32x128xf32>
    %6 = tpu.matmul %4, %5, %cst {dimension_numbers = #tpu.dot_dimension_numbers<[1], [0], [0], [1], [0, 0, 1, 1], [], []>} : vector<32x128xbf16>, vector<128x128xbf16>, vector<32x128xf32> -> vector<32x128xf32>
    %7 = arith.addf %3, %6 : vector<32x128xf32>
    %c0_6 = arith.constant 0 : index
    %c0_7 = arith.constant 0 : index
    %8 = vector.load %arg7[%c0_6, %c0_7] : memref<32x128xf32, #tpu.memory_space<vmem>>, vector<32x128xf32>
    tpu.vector_store %arg7[%c0_6, %c0_7], %7 {strides = array<i32>} : memref<32x128xf32, #tpu.memory_space<vmem>>, vector<32x128xf32>,
    %c2_i32 = arith.constant 2 : i32
    %9 = arith.cmpi eq, %arg2, %c2_i32 : i32
    %10 = arith.extui %9 : i1 to i32
    %c0_i32_8 = arith.constant 0 : i32
    %11 = arith.cmpi ne, %10, %c0_i32_8 : i32
    scf.if %11 {
      %c0_9 = arith.constant 0 : index
      %c0_10 = arith.constant 0 : index
      %12 = vector.load %arg7[%c0_9, %c0_10] : memref<32x128xf32, #tpu.memory_space<vmem>>, vector<32x128xf32>
      %c0_11 = arith.constant 0 : index
      %c0_12 = arith.constant 0 : index
      %13 = vector.load %arg5[%c0_11, %c0_12] : memref<1x128xf32, #tpu.memory_space<vmem>>, vector<1x128xf32>
      %14 = vector.broadcast %13 : vector<1x128xf32> to vector<32x128xf32>
      %15 = arith.addf %12, %14 : vector<32x128xf32>
      %c0_13 = arith.constant 0 : index
      %c0_14 = arith.constant 0 : index
      %16 = vector.load %arg6[%c0_13, %c0_14] : memref<32x128xf32, #tpu.memory_space<vmem>>, vector<32x128xf32>
      tpu.vector_store %arg6[%c0_13, %c0_14], %15 {strides = array<i32>} : memref<32x128xf32, #tpu.memory_space<vmem>>, vector<32x128xf32>,
    } else {
    }
    return
  }
  func.func @transform_0(%arg0: i32, %arg1: i32, %arg2: i32) -> (i32, i32) {
    %c0_i32 = arith.constant 0 : i32
    return %arg0, %arg2 : i32, i32
  }
  func.func @transform_1(%arg0: i32, %arg1: i32, %arg2: i32) -> (i32, i32) {
    %c0_i32 = arith.constant 0 : i32
    return %arg2, %arg1 : i32, i32
  }
  func.func @transform_2(%arg0: i32, %arg1: i32, %arg2: i32) -> (i32, i32) {
    %c0_i32 = arith.constant 0 : i32
    %c0_i32_0 = arith.constant 0 : i32
    return %c0_i32, %arg1 : i32, i32
  }
  func.func @transform_3(%arg0: i32, %arg1: i32, %arg2: i32) -> (i32, i32) {
    %c0_i32 = arith.constant 0 : i32
    return %arg0, %arg1 : i32, i32
  }
}

module attributes {stable_mosaic.version = 11 : i64} {
  func.func @_mm_bias_kernel(%arg0: i32, %arg1: i32, %arg2: i32, %arg3: memref<32x128xbf16, #tpu.memory_space<vmem>>, %arg4: memref<128x128xbf16, #tpu.memory_space<vmem>>, %arg5: memref<1x128xf32, #tpu.memory_space<vmem>>, %arg6: memref<32x128xf32, #tpu.memory_space<vmem>>, %arg7: memref<32x128xf32, #tpu.memory_space<vmem>>) attributes {dimension_semantics = [#tpu.dimension_semantics<parallel>, #tpu.dimension_semantics<parallel>, #tpu.dimension_semantics<arbitrary>], iteration_bounds = array<i64: 1, 1, 3>, scalar_prefetch = 0 : i64, scratch_operands = 1 : i64, tpu.core_type = #tpu.core_type<tc>, window_params = [{transform_indices = @transform_0, window_bounds = array<i64: 32, 128>}, {transform_indices = @transform_1, window_bounds = array<i64: 128, 128>}, {transform_indices = @transform_2, window_bounds = array<i64: 1, 128>}, {transform_indices = @transform_3, window_bounds = array<i64: 32, 128>}]} {
    %c0_i32 = arith.constant 0 : i32
    %0 = arith.cmpi eq, %arg2, %c0_i32 : i32
    %1 = arith.extui %0 : i1 to i32
    %c0_i32_0 = arith.constant 0 : i32
    %2 = arith.cmpi ne, %1, %c0_i32_0 : i32
    scf.if %2 {
      %cst_9 = arith.constant 0.000000e+00 : f32
      %12 = vector.broadcast %cst_9 : f32 to vector<32x128xf32>
      %c0_10 = arith.constant 0 : index
      %c0_11 = arith.constant 0 : index
      %13 = vector.load %arg7[%c0_10, %c0_11] : memref<32x128xf32, #tpu.memory_space<vmem>>, vector<32x128xf32>
      tpu.vector_store %arg7[%c0_10, %c0_11], %12 {strides = array<i32>} : memref<32x128xf32, #tpu.memory_space<vmem>>, vector<32x128xf32>,
    } else {
    }
    %c0 = arith.constant 0 : index
    %c0_1 = arith.constant 0 : index
    %3 = vector.load %arg7[%c0, %c0_1] : memref<32x128xf32, #tpu.memory_space<vmem>>, vector<32x128xf32>
    %c0_2 = arith.constant 0 : index
    %c0_3 = arith.constant 0 : index
    %4 = vector.load %arg3[%c0_2, %c0_3] : memref<32x128xbf16, #tpu.memory_space<vmem>>, vector<32x128xbf16>
    %c0_4 = arith.constant 0 : index
    %c0_5 = arith.constant 0 : index
    %5 = vector.load %arg4[%c0_4, %c0_5] : memref<128x128xbf16, #tpu.memory_space<vmem>>, vector<128x128xbf16>
    %cst = arith.constant dense<0.000000e+00> : vector<32x128xf32>
    %6 = tpu.matmul %4, %5, %cst {dimension_numbers = #tpu.dot_dimension_numbers<[1], [0], [0], [1], [0, 0, 1, 1], [], []>} : vector<32x128xbf16>, vector<128x128xbf16>, vector<32x128xf32> -> vector<32x128xf32>
    %7 = arith.addf %3, %6 : vector<32x128xf32>
    %c0_6 = arith.constant 0 : index
    %c0_7 = arith.constant 0 : index
    %8 = vector.load %arg7[%c0_6, %c0_7] : memref<32x128xf32, #tpu.memory_space<vmem>>, vector<32x128xf32>
    tpu.vector_store %arg7[%c0_6, %c0_7], %7 {strides = array<i32>} : memref<32x128xf32, #tpu.memory_space<vmem>>, vector<32x128xf32>,
    %c2_i32 = arith.constant 2 : i32
    %9 = arith.cmpi eq, %arg2, %c2_i32 : i32
    %10 = arith.extui %9 : i1 to i32
    %c0_i32_8 = arith.constant 0 : i32
    %11 = arith.cmpi ne, %10, %c0_i32_8 : i32
    scf.if %11 {
      %c0_9 = arith.constant 0 : index
      %c0_10 = arith.constant 0 : index
      %12 = vector.load %arg7[%c0_9, %c0_10] : memref<32x128xf32, #tpu.memory_space<vmem>>, vector<32x128xf32>
      %c0_11 = arith.constant 0 : index
      %c0_12 = arith.constant 0 : index
      %13 = vector.load %arg5[%c0_11, %c0_12] : memref<1x128xf32, #tpu.memory_space<vmem>>, vector<1x128xf32>
      %14 = vector.broadcast %13 : vector<1x128xf32> to vector<32x128xf32>
      %15 = arith.addf %12, %14 : vector<32x128xf32>
      %cst_13 = arith.constant 0.000000e+00 : f32
      %16 = vector.broadcast %cst_13 : f32 to vector<32x128xf32>
      %17 = arith.maximumf %15, %16 : vector<32x128xf32>
      %c0_14 = arith.constant 0 : index
      %c0_15 = arith.constant 0 : index
      %18 = vector.load %arg6[%c0_14, %c0_15] : memref<32x128xf32, #tpu.memory_space<vmem>>, vector<32x128xf32>
      tpu.vector_store %arg6[%c0_14, %c0_15], %17 {strides = array<i32>} : memref<32x128xf32, #tpu.memory_space<vmem>>, vector<32x128xf32>,
    } else {
    }
    return
  }
  func.func @transform_0(%arg0: i32, %arg1: i32, %arg2: i32) -> (i32, i32) {
    %c0_i32 = arith.constant 0 : i32
    return %arg0, %arg2 : i32, i32
  }
  func.func @transform_1(%arg0: i32, %arg1: i32, %arg2: i32) -> (i32, i32) {
    %c0_i32 = arith.constant 0 : i32
    return %arg2, %arg1 : i32, i32
  }
  func.func @transform_2(%arg0: i32, %arg1: i32, %arg2: i32) -> (i32, i32) {
    %c0_i32 = arith.constant 0 : i32
    %c0_i32_0 = arith.constant 0 : i32
    return %c0_i32, %arg1 : i32, i32
  }
  func.func @transform_3(%arg0: i32, %arg1: i32, %arg2: i32) -> (i32, i32) {
    %c0_i32 = arith.constant 0 : i32
    return %arg0, %arg1 : i32, i32
  }
}

module attributes {stable_mosaic.version = 11 : i64} {
  func.func @_mm_bias_kernel(%arg0: i32, %arg1: i32, %arg2: i32, %arg3: memref<32x128xbf16, #tpu.memory_space<vmem>>, %arg4: memref<128x128xbf16, #tpu.memory_space<vmem>>, %arg5: memref<1x128xf32, #tpu.memory_space<vmem>>, %arg6: memref<32x128xf32, #tpu.memory_space<vmem>>, %arg7: memref<32x128xf32, #tpu.memory_space<vmem>>) attributes {dimension_semantics = [#tpu.dimension_semantics<parallel>, #tpu.dimension_semantics<parallel>, #tpu.dimension_semantics<arbitrary>], iteration_bounds = array<i64: 1, 1, 1>, scalar_prefetch = 0 : i64, scratch_operands = 1 : i64, tpu.core_type = #tpu.core_type<tc>, window_params = [{transform_indices = @transform_0, window_bounds = array<i64: 32, 128>}, {transform_indices = @transform_1, window_bounds = array<i64: 128, 128>}, {transform_indices = @transform_2, window_bounds = array<i64: 1, 128>}, {transform_indices = @transform_3, window_bounds = array<i64: 32, 128>}]} {
    %c0_i32 = arith.constant 0 : i32
    %0 = arith.cmpi eq, %arg2, %c0_i32 : i32
    %1 = arith.extui %0 : i1 to i32
    %c0_i32_0 = arith.constant 0 : i32
    %2 = arith.cmpi ne, %1, %c0_i32_0 : i32
    scf.if %2 {
      %cst_10 = arith.constant 0.000000e+00 : f32
      %12 = vector.broadcast %cst_10 : f32 to vector<32x128xf32>
      %c0_11 = arith.constant 0 : index
      %c0_12 = arith.constant 0 : index
      %13 = vector.load %arg7[%c0_11, %c0_12] : memref<32x128xf32, #tpu.memory_space<vmem>>, vector<32x128xf32>
      tpu.vector_store %arg7[%c0_11, %c0_12], %12 {strides = array<i32>} : memref<32x128xf32, #tpu.memory_space<vmem>>, vector<32x128xf32>,
    } else {
    }
    %c0 = arith.constant 0 : index
    %c0_1 = arith.constant 0 : index
    %3 = vector.load %arg7[%c0, %c0_1] : memref<32x128xf32, #tpu.memory_space<vmem>>, vector<32x128xf32>
    %c0_2 = arith.constant 0 : index
    %c0_3 = arith.constant 0 : index
    %4 = vector.load %arg3[%c0_2, %c0_3] : memref<32x128xbf16, #tpu.memory_space<vmem>>, vector<32x128xbf16>
    %c0_4 = arith.constant 0 : index
    %c0_5 = arith.constant 0 : index
    %5 = vector.load %arg4[%c0_4, %c0_5] : memref<128x128xbf16, #tpu.memory_space<vmem>>, vector<128x128xbf16>
    %cst = arith.constant dense<0.000000e+00> : vector<32x128xf32>
    %6 = tpu.matmul %4, %5, %cst {dimension_numbers = #tpu.dot_dimension_numbers<[1], [0], [0], [1], [0, 0, 1, 1], [], []>} : vector<32x128xbf16>, vector<128x128xbf16>, vector<32x128xf32> -> vector<32x128xf32>
    %7 = arith.addf %3, %6 : vector<32x128xf32>
    %c0_6 = arith.constant 0 : index
    %c0_7 = arith.constant 0 : index
    %8 = vector.load %arg7[%c0_6, %c0_7] : memref<32x128xf32, #tpu.memory_space<vmem>>, vector<32x128xf32>
    tpu.vector_store %arg7[%c0_6, %c0_7], %7 {strides = array<i32>} : memref<32x128xf32, #tpu.memory_space<vmem>>, vector<32x128xf32>,
    %c0_i32_8 = arith.constant 0 : i32
    %9 = arith.cmpi eq, %arg2, %c0_i32_8 : i32
    %10 = arith.extui %9 : i1 to i32
    %c0_i32_9 = arith.constant 0 : i32
    %11 = arith.cmpi ne, %10, %c0_i32_9 : i32
    scf.if %11 {
      %c0_10 = arith.constant 0 : index
      %c0_11 = arith.constant 0 : index
      %12 = vector.load %arg7[%c0_10, %c0_11] : memref<32x128xf32, #tpu.memory_space<vmem>>, vector<32x128xf32>
      %c0_12 = arith.constant 0 : index
      %c0_13 = arith.constant 0 : index
      %13 = vector.load %arg5[%c0_12, %c0_13] : memref<1x128xf32, #tpu.memory_space<vmem>>, vector<1x128xf32>
      %14 = vector.broadcast %13 : vector<1x128xf32> to vector<32x128xf32>
      %15 = arith.addf %12, %14 : vector<32x128xf32>
      %c0_14 = arith.constant 0 : index
      %c0_15 = arith.constant 0 : index
      %16 = vector.load %arg6[%c0_14, %c0_15] : memref<32x128xf32, #tpu.memory_space<vmem>>, vector<32x128xf32>
      tpu.vector_store %arg6[%c0_14, %c0_15], %15 {strides = array<i32>} : memref<32x128xf32, #tpu.memory_space<vmem>>, vector<32x128xf32>,
    } else {
    }
    return
  }
  func.func @transform_0(%arg0: i32, %arg1: i32, %arg2: i32) -> (i32, i32) {
    %c0_i32 = arith.constant 0 : i32
    return %arg0, %arg2 : i32, i32
  }
  func.func @transform_1(%arg0: i32, %arg1: i32, %arg2: i32) -> (i32, i32) {
    %c0_i32 = arith.constant 0 : i32
    return %arg2, %arg1 : i32, i32
  }
  func.func @transform_2(%arg0: i32, %arg1: i32, %arg2: i32) -> (i32, i32) {
    %c0_i32 = arith.constant 0 : i32
    %c0_i32_0 = arith.constant 0 : i32
    return %c0_i32, %arg1 : i32, i32
  }
  func.func @transform_3(%arg0: i32, %arg1: i32, %arg2: i32) -> (i32, i32) {
    %c0_i32 = arith.constant 0 : i32
    return %arg0, %arg1 : i32, i32
  }
}

module attributes {stable_mosaic.version = 11 : i64} {
  func.func @_mm_bias_kernel(%arg0: i32, %arg1: i32, %arg2: i32, %arg3: memref<32x128xbf16, #tpu.memory_space<vmem>>, %arg4: memref<128x128xbf16, #tpu.memory_space<vmem>>, %arg5: memref<1x128xf32, #tpu.memory_space<vmem>>, %arg6: memref<32x128xf32, #tpu.memory_space<vmem>>, %arg7: memref<32x128xf32, #tpu.memory_space<vmem>>) attributes {dimension_semantics = [#tpu.dimension_semantics<parallel>, #tpu.dimension_semantics<parallel>, #tpu.dimension_semantics<arbitrary>], iteration_bounds = array<i64: 1, 1, 1>, scalar_prefetch = 0 : i64, scratch_operands = 1 : i64, tpu.core_type = #tpu.core_type<tc>, window_params = [{transform_indices = @transform_0, window_bounds = array<i64: 32, 128>}, {transform_indices = @transform_1, window_bounds = array<i64: 128, 128>}, {transform_indices = @transform_2, window_bounds = array<i64: 1, 128>}, {transform_indices = @transform_3, window_bounds = array<i64: 32, 128>}]} {
    %c0_i32 = arith.constant 0 : i32
    %0 = arith.cmpi eq, %arg2, %c0_i32 : i32
    %1 = arith.extui %0 : i1 to i32
    %c0_i32_0 = arith.constant 0 : i32
    %2 = arith.cmpi ne, %1, %c0_i32_0 : i32
    scf.if %2 {
      %cst_10 = arith.constant 0.000000e+00 : f32
      %12 = vector.broadcast %cst_10 : f32 to vector<32x128xf32>
      %c0_11 = arith.constant 0 : index
      %c0_12 = arith.constant 0 : index
      %13 = vector.load %arg7[%c0_11, %c0_12] : memref<32x128xf32, #tpu.memory_space<vmem>>, vector<32x128xf32>
      tpu.vector_store %arg7[%c0_11, %c0_12], %12 {strides = array<i32>} : memref<32x128xf32, #tpu.memory_space<vmem>>, vector<32x128xf32>,
    } else {
    }
    %c0 = arith.constant 0 : index
    %c0_1 = arith.constant 0 : index
    %3 = vector.load %arg7[%c0, %c0_1] : memref<32x128xf32, #tpu.memory_space<vmem>>, vector<32x128xf32>
    %c0_2 = arith.constant 0 : index
    %c0_3 = arith.constant 0 : index
    %4 = vector.load %arg3[%c0_2, %c0_3] : memref<32x128xbf16, #tpu.memory_space<vmem>>, vector<32x128xbf16>
    %c0_4 = arith.constant 0 : index
    %c0_5 = arith.constant 0 : index
    %5 = vector.load %arg4[%c0_4, %c0_5] : memref<128x128xbf16, #tpu.memory_space<vmem>>, vector<128x128xbf16>
    %cst = arith.constant dense<0.000000e+00> : vector<32x128xf32>
    %6 = tpu.matmul %4, %5, %cst {dimension_numbers = #tpu.dot_dimension_numbers<[1], [0], [0], [1], [0, 0, 1, 1], [], []>} : vector<32x128xbf16>, vector<128x128xbf16>, vector<32x128xf32> -> vector<32x128xf32>
    %7 = arith.addf %3, %6 : vector<32x128xf32>
    %c0_6 = arith.constant 0 : index
    %c0_7 = arith.constant 0 : index
    %8 = vector.load %arg7[%c0_6, %c0_7] : memref<32x128xf32, #tpu.memory_space<vmem>>, vector<32x128xf32>
    tpu.vector_store %arg7[%c0_6, %c0_7], %7 {strides = array<i32>} : memref<32x128xf32, #tpu.memory_space<vmem>>, vector<32x128xf32>,
    %c0_i32_8 = arith.constant 0 : i32
    %9 = arith.cmpi eq, %arg2, %c0_i32_8 : i32
    %10 = arith.extui %9 : i1 to i32
    %c0_i32_9 = arith.constant 0 : i32
    %11 = arith.cmpi ne, %10, %c0_i32_9 : i32
    scf.if %11 {
      %c0_10 = arith.constant 0 : index
      %c0_11 = arith.constant 0 : index
      %12 = vector.load %arg7[%c0_10, %c0_11] : memref<32x128xf32, #tpu.memory_space<vmem>>, vector<32x128xf32>
      %c0_12 = arith.constant 0 : index
      %c0_13 = arith.constant 0 : index
      %13 = vector.load %arg5[%c0_12, %c0_13] : memref<1x128xf32, #tpu.memory_space<vmem>>, vector<1x128xf32>
      %14 = vector.broadcast %13 : vector<1x128xf32> to vector<32x128xf32>
      %15 = arith.addf %12, %14 : vector<32x128xf32>
      %cst_14 = arith.constant 0.000000e+00 : f32
      %16 = vector.broadcast %cst_14 : f32 to vector<32x128xf32>
      %17 = arith.maximumf %15, %16 : vector<32x128xf32>
      %c0_15 = arith.constant 0 : index
      %c0_16 = arith.constant 0 : index
      %18 = vector.load %arg6[%c0_15, %c0_16] : memref<32x128xf32, #tpu.memory_space<vmem>>, vector<32x128xf32>
      tpu.vector_store %arg6[%c0_15, %c0_16], %17 {strides = array<i32>} : memref<32x128xf32, #tpu.memory_space<vmem>>, vector<32x128xf32>,
    } else {
    }
    return
  }
  func.func @transform_0(%arg0: i32, %arg1: i32, %arg2: i32) -> (i32, i32) {
    %c0_i32 = arith.constant 0 : i32
    return %arg0, %arg2 : i32, i32
  }
  func.func @transform_1(%arg0: i32, %arg1: i32, %arg2: i32) -> (i32, i32) {
    %c0_i32 = arith.constant 0 : i32
    return %arg2, %arg1 : i32, i32
  }
  func.func @transform_2(%arg0: i32, %arg1: i32, %arg2: i32) -> (i32, i32) {
    %c0_i32 = arith.constant 0 : i32
    %c0_i32_0 = arith.constant 0 : i32
    return %c0_i32, %arg1 : i32, i32
  }
  func.func @transform_3(%arg0: i32, %arg1: i32, %arg2: i32) -> (i32, i32) {
    %c0_i32 = arith.constant 0 : i32
    return %arg0, %arg1 : i32, i32
  }
}

module attributes {stable_mosaic.version = 11 : i64} {
  func.func @_mm_bias_kernel(%arg0: i32, %arg1: i32, %arg2: i32, %arg3: memref<8x512xbf16, #tpu.memory_space<vmem>>, %arg4: memref<512x128xbf16, #tpu.memory_space<vmem>>, %arg5: memref<1x128xf32, #tpu.memory_space<vmem>>, %arg6: memref<8x128xf32, #tpu.memory_space<vmem>>, %arg7: memref<8x128xf32, #tpu.memory_space<vmem>>) attributes {dimension_semantics = [#tpu.dimension_semantics<parallel>, #tpu.dimension_semantics<parallel>, #tpu.dimension_semantics<arbitrary>], iteration_bounds = array<i64: 1, 1, 1>, scalar_prefetch = 0 : i64, scratch_operands = 1 : i64, tpu.core_type = #tpu.core_type<tc>, window_params = [{transform_indices = @transform_0, window_bounds = array<i64: 8, 512>}, {transform_indices = @transform_1, window_bounds = array<i64: 512, 128>}, {transform_indices = @transform_2, window_bounds = array<i64: 1, 128>}, {transform_indices = @transform_3, window_bounds = array<i64: 8, 128>}]} {
    %c0_i32 = arith.constant 0 : i32
    %0 = arith.cmpi eq, %arg2, %c0_i32 : i32
    %1 = arith.extui %0 : i1 to i32
    %c0_i32_0 = arith.constant 0 : i32
    %2 = arith.cmpi ne, %1, %c0_i32_0 : i32
    scf.if %2 {
      %cst_10 = arith.constant 0.000000e+00 : f32
      %12 = vector.broadcast %cst_10 : f32 to vector<8x128xf32>
      %c0_11 = arith.constant 0 : index
      %c0_12 = arith.constant 0 : index
      %13 = vector.load %arg7[%c0_11, %c0_12] : memref<8x128xf32, #tpu.memory_space<vmem>>, vector<8x128xf32>
      tpu.vector_store %arg7[%c0_11, %c0_12], %12 {strides = array<i32>} : memref<8x128xf32, #tpu.memory_space<vmem>>, vector<8x128xf32>,
    } else {
    }
    %c0 = arith.constant 0 : index
    %c0_1 = arith.constant 0 : index
    %3 = vector.load %arg7[%c0, %c0_1] : memref<8x128xf32, #tpu.memory_space<vmem>>, vector<8x128xf32>
    %c0_2 = arith.constant 0 : index
    %c0_3 = arith.constant 0 : index
    %4 = vector.load %arg3[%c0_2, %c0_3] : memref<8x512xbf16, #tpu.memory_space<vmem>>, vector<8x512xbf16>
    %c0_4 = arith.constant 0 : index
    %c0_5 = arith.constant 0 : index
    %5 = vector.load %arg4[%c0_4, %c0_5] : memref<512x128xbf16, #tpu.memory_space<vmem>>, vector<512x128xbf16>
    %cst = arith.constant dense<0.000000e+00> : vector<8x128xf32>
    %6 = tpu.matmul %4, %5, %cst {dimension_numbers = #tpu.dot_dimension_numbers<[1], [0], [0], [1], [0, 0, 1, 1], [], []>} : vector<8x512xbf16>, vector<512x128xbf16>, vector<8x128xf32> -> vector<8x128xf32>
    %7 = arith.addf %3, %6 : vector<8x128xf32>
    %c0_6 = arith.constant 0 : index
    %c0_7 = arith.constant 0 : index
    %8 = vector.load %arg7[%c0_6, %c0_7] : memref<8x128xf32, #tpu.memory_space<vmem>>, vector<8x128xf32>
    tpu.vector_store %arg7[%c0_6, %c0_7], %7 {strides = array<i32>} : memref<8x128xf32, #tpu.memory_space<vmem>>, vector<8x128xf32>,
    %c0_i32_8 = arith.constant 0 : i32
    %9 = arith.cmpi eq, %arg2, %c0_i32_8 : i32
    %10 = arith.extui %9 : i1 to i32
    %c0_i32_9 = arith.constant 0 : i32
    %11 = arith.cmpi ne, %10, %c0_i32_9 : i32
    scf.if %11 {
      %c0_10 = arith.constant 0 : index
      %c0_11 = arith.constant 0 : index
      %12 = vector.load %arg7[%c0_10, %c0_11] : memref<8x128xf32, #tpu.memory_space<vmem>>, vector<8x128xf32>
      %c0_12 = arith.constant 0 : index
      %c0_13 = arith.constant 0 : index
      %13 = vector.load %arg5[%c0_12, %c0_13] : memref<1x128xf32, #tpu.memory_space<vmem>>, vector<1x128xf32>
      %14 = vector.broadcast %13 : vector<1x128xf32> to vector<8x128xf32>
      %15 = arith.addf %12, %14 : vector<8x128xf32>
      %c0_14 = arith.constant 0 : index
      %c0_15 = arith.constant 0 : index
      %16 = vector.load %arg6[%c0_14, %c0_15] : memref<8x128xf32, #tpu.memory_space<vmem>>, vector<8x128xf32>
      tpu.vector_store %arg6[%c0_14, %c0_15], %15 {strides = array<i32>} : memref<8x128xf32, #tpu.memory_space<vmem>>, vector<8x128xf32>,
    } else {
    }
    return
  }
  func.func @transform_0(%arg0: i32, %arg1: i32, %arg2: i32) -> (i32, i32) {
    %c0_i32 = arith.constant 0 : i32
    return %arg0, %arg2 : i32, i32
  }
  func.func @transform_1(%arg0: i32, %arg1: i32, %arg2: i32) -> (i32, i32) {
    %c0_i32 = arith.constant 0 : i32
    return %arg2, %arg1 : i32, i32
  }
  func.func @transform_2(%arg0: i32, %arg1: i32, %arg2: i32) -> (i32, i32) {
    %c0_i32 = arith.constant 0 : i32
    %c0_i32_0 = arith.constant 0 : i32
    return %c0_i32, %arg1 : i32, i32
  }
  func.func @transform_3(%arg0: i32, %arg1: i32, %arg2: i32) -> (i32, i32) {
    %c0_i32 = arith.constant 0 : i32
    return %arg0, %arg1 : i32, i32
  }
}

module attributes {stable_mosaic.version = 11 : i64} {
  func.func @_mm_bias_kernel(%arg0: i32, %arg1: i32, %arg2: i32, %arg3: memref<8x128xbf16, #tpu.memory_space<vmem>>, %arg4: memref<128x256xbf16, #tpu.memory_space<vmem>>, %arg5: memref<1x256xf32, #tpu.memory_space<vmem>>, %arg6: memref<8x256xf32, #tpu.memory_space<vmem>>, %arg7: memref<8x256xf32, #tpu.memory_space<vmem>>) attributes {dimension_semantics = [#tpu.dimension_semantics<parallel>, #tpu.dimension_semantics<parallel>, #tpu.dimension_semantics<arbitrary>], iteration_bounds = array<i64: 1, 2, 1>, scalar_prefetch = 0 : i64, scratch_operands = 1 : i64, tpu.core_type = #tpu.core_type<tc>, window_params = [{transform_indices = @transform_0, window_bounds = array<i64: 8, 128>}, {transform_indices = @transform_1, window_bounds = array<i64: 128, 256>}, {transform_indices = @transform_2, window_bounds = array<i64: 1, 256>}, {transform_indices = @transform_3, window_bounds = array<i64: 8, 256>}]} {
    %c0_i32 = arith.constant 0 : i32
    %0 = arith.cmpi eq, %arg2, %c0_i32 : i32
    %1 = arith.extui %0 : i1 to i32
    %c0_i32_0 = arith.constant 0 : i32
    %2 = arith.cmpi ne, %1, %c0_i32_0 : i32
    scf.if %2 {
      %cst_10 = arith.constant 0.000000e+00 : f32
      %12 = vector.broadcast %cst_10 : f32 to vector<8x256xf32>
      %c0_11 = arith.constant 0 : index
      %c0_12 = arith.constant 0 : index
      %13 = vector.load %arg7[%c0_11, %c0_12] : memref<8x256xf32, #tpu.memory_space<vmem>>, vector<8x256xf32>
      tpu.vector_store %arg7[%c0_11, %c0_12], %12 {strides = array<i32>} : memref<8x256xf32, #tpu.memory_space<vmem>>, vector<8x256xf32>,
    } else {
    }
    %c0 = arith.constant 0 : index
    %c0_1 = arith.constant 0 : index
    %3 = vector.load %arg7[%c0, %c0_1] : memref<8x256xf32, #tpu.memory_space<vmem>>, vector<8x256xf32>
    %c0_2 = arith.constant 0 : index
    %c0_3 = arith.constant 0 : index
    %4 = vector.load %arg3[%c0_2, %c0_3] : memref<8x128xbf16, #tpu.memory_space<vmem>>, vector<8x128xbf16>
    %c0_4 = arith.constant 0 : index
    %c0_5 = arith.constant 0 : index
    %5 = vector.load %arg4[%c0_4, %c0_5] : memref<128x256xbf16, #tpu.memory_space<vmem>>, vector<128x256xbf16>
    %cst = arith.constant dense<0.000000e+00> : vector<8x256xf32>
    %6 = tpu.matmul %4, %5, %cst {dimension_numbers = #tpu.dot_dimension_numbers<[1], [0], [0], [1], [0, 0, 1, 1], [], []>} : vector<8x128xbf16>, vector<128x256xbf16>, vector<8x256xf32> -> vector<8x256xf32>
    %7 = arith.addf %3, %6 : vector<8x256xf32>
    %c0_6 = arith.constant 0 : index
    %c0_7 = arith.constant 0 : index
    %8 = vector.load %arg7[%c0_6, %c0_7] : memref<8x256xf32, #tpu.memory_space<vmem>>, vector<8x256xf32>
    tpu.vector_store %arg7[%c0_6, %c0_7], %7 {strides = array<i32>} : memref<8x256xf32, #tpu.memory_space<vmem>>, vector<8x256xf32>,
    %c0_i32_8 = arith.constant 0 : i32
    %9 = arith.cmpi eq, %arg2, %c0_i32_8 : i32
    %10 = arith.extui %9 : i1 to i32
    %c0_i32_9 = arith.constant 0 : i32
    %11 = arith.cmpi ne, %10, %c0_i32_9 : i32
    scf.if %11 {
      %c0_10 = arith.constant 0 : index
      %c0_11 = arith.constant 0 : index
      %12 = vector.load %arg7[%c0_10, %c0_11] : memref<8x256xf32, #tpu.memory_space<vmem>>, vector<8x256xf32>
      %c0_12 = arith.constant 0 : index
      %c0_13 = arith.constant 0 : index
      %13 = vector.load %arg5[%c0_12, %c0_13] : memref<1x256xf32, #tpu.memory_space<vmem>>, vector<1x256xf32>
      %14 = vector.broadcast %13 : vector<1x256xf32> to vector<8x256xf32>
      %15 = arith.addf %12, %14 : vector<8x256xf32>
      %c0_14 = arith.constant 0 : index
      %c0_15 = arith.constant 0 : index
      %16 = vector.load %arg6[%c0_14, %c0_15] : memref<8x256xf32, #tpu.memory_space<vmem>>, vector<8x256xf32>
      tpu.vector_store %arg6[%c0_14, %c0_15], %15 {strides = array<i32>} : memref<8x256xf32, #tpu.memory_space<vmem>>, vector<8x256xf32>,
    } else {
    }
    return
  }
  func.func @transform_0(%arg0: i32, %arg1: i32, %arg2: i32) -> (i32, i32) {
    %c0_i32 = arith.constant 0 : i32
    return %arg0, %arg2 : i32, i32
  }
  func.func @transform_1(%arg0: i32, %arg1: i32, %arg2: i32) -> (i32, i32) {
    %c0_i32 = arith.constant 0 : i32
    return %arg2, %arg1 : i32, i32
  }
  func.func @transform_2(%arg0: i32, %arg1: i32, %arg2: i32) -> (i32, i32) {
    %c0_i32 = arith.constant 0 : i32
    %c0_i32_0 = arith.constant 0 : i32
    return %c0_i32, %arg1 : i32, i32
  }
  func.func @transform_3(%arg0: i32, %arg1: i32, %arg2: i32) -> (i32, i32) {
    %c0_i32 = arith.constant 0 : i32
    return %arg0, %arg1 : i32, i32
  }
}

module attributes {stable_mosaic.version = 11 : i64} {
  func.func @_mm_bias_kernel(%arg0: i32, %arg1: i32, %arg2: i32, %arg3: memref<128x128xbf16, #tpu.memory_space<vmem>>, %arg4: memref<128x128xbf16, #tpu.memory_space<vmem>>, %arg5: memref<1x128xf32, #tpu.memory_space<vmem>>, %arg6: memref<128x128xf32, #tpu.memory_space<vmem>>, %arg7: memref<128x128xf32, #tpu.memory_space<vmem>>) attributes {dimension_semantics = [#tpu.dimension_semantics<parallel>, #tpu.dimension_semantics<parallel>, #tpu.dimension_semantics<arbitrary>], iteration_bounds = array<i64: 1, 1, 1>, scalar_prefetch = 0 : i64, scratch_operands = 1 : i64, tpu.core_type = #tpu.core_type<tc>, window_params = [{transform_indices = @transform_0, window_bounds = array<i64: 128, 128>}, {transform_indices = @transform_1, window_bounds = array<i64: 128, 128>}, {transform_indices = @transform_2, window_bounds = array<i64: 1, 128>}, {transform_indices = @transform_3, window_bounds = array<i64: 128, 128>}]} {
    %c0_i32 = arith.constant 0 : i32
    %0 = arith.cmpi eq, %arg2, %c0_i32 : i32
    %1 = arith.extui %0 : i1 to i32
    %c0_i32_0 = arith.constant 0 : i32
    %2 = arith.cmpi ne, %1, %c0_i32_0 : i32
    scf.if %2 {
      %cst_10 = arith.constant 0.000000e+00 : f32
      %12 = vector.broadcast %cst_10 : f32 to vector<128x128xf32>
      %c0_11 = arith.constant 0 : index
      %c0_12 = arith.constant 0 : index
      %13 = vector.load %arg7[%c0_11, %c0_12] : memref<128x128xf32, #tpu.memory_space<vmem>>, vector<128x128xf32>
      tpu.vector_store %arg7[%c0_11, %c0_12], %12 {strides = array<i32>} : memref<128x128xf32, #tpu.memory_space<vmem>>, vector<128x128xf32>,
    } else {
    }
    %c0 = arith.constant 0 : index
    %c0_1 = arith.constant 0 : index
    %3 = vector.load %arg7[%c0, %c0_1] : memref<128x128xf32, #tpu.memory_space<vmem>>, vector<128x128xf32>
    %c0_2 = arith.constant 0 : index
    %c0_3 = arith.constant 0 : index
    %4 = vector.load %arg3[%c0_2, %c0_3] : memref<128x128xbf16, #tpu.memory_space<vmem>>, vector<128x128xbf16>
    %c0_4 = arith.constant 0 : index
    %c0_5 = arith.constant 0 : index
    %5 = vector.load %arg4[%c0_4, %c0_5] : memref<128x128xbf16, #tpu.memory_space<vmem>>, vector<128x128xbf16>
    %cst = arith.constant dense<0.000000e+00> : vector<128x128xf32>
    %6 = tpu.matmul %4, %5, %cst {dimension_numbers = #tpu.dot_dimension_numbers<[1], [0], [0], [1], [0, 0, 1, 1], [], []>} : vector<128x128xbf16>, vector<128x128xbf16>, vector<128x128xf32> -> vector<128x128xf32>
    %7 = arith.addf %3, %6 : vector<128x128xf32>
    %c0_6 = arith.constant 0 : index
    %c0_7 = arith.constant 0 : index
    %8 = vector.load %arg7[%c0_6, %c0_7] : memref<128x128xf32, #tpu.memory_space<vmem>>, vector<128x128xf32>
    tpu.vector_store %arg7[%c0_6, %c0_7], %7 {strides = array<i32>} : memref<128x128xf32, #tpu.memory_space<vmem>>, vector<128x128xf32>,
    %c0_i32_8 = arith.constant 0 : i32
    %9 = arith.cmpi eq, %arg2, %c0_i32_8 : i32
    %10 = arith.extui %9 : i1 to i32
    %c0_i32_9 = arith.constant 0 : i32
    %11 = arith.cmpi ne, %10, %c0_i32_9 : i32
    scf.if %11 {
      %c0_10 = arith.constant 0 : index
      %c0_11 = arith.constant 0 : index
      %12 = vector.load %arg7[%c0_10, %c0_11] : memref<128x128xf32, #tpu.memory_space<vmem>>, vector<128x128xf32>
      %c0_12 = arith.constant 0 : index
      %c0_13 = arith.constant 0 : index
      %13 = vector.load %arg5[%c0_12, %c0_13] : memref<1x128xf32, #tpu.memory_space<vmem>>, vector<1x128xf32>
      %14 = vector.broadcast %13 : vector<1x128xf32> to vector<128x128xf32>
      %15 = arith.addf %12, %14 : vector<128x128xf32>
      %c0_14 = arith.constant 0 : index
      %c0_15 = arith.constant 0 : index
      %16 = vector.load %arg6[%c0_14, %c0_15] : memref<128x128xf32, #tpu.memory_space<vmem>>, vector<128x128xf32>
      tpu.vector_store %arg6[%c0_14, %c0_15], %15 {strides = array<i32>} : memref<128x128xf32, #tpu.memory_space<vmem>>, vector<128x128xf32>,
    } else {
    }
    return
  }
  func.func @transform_0(%arg0: i32, %arg1: i32, %arg2: i32) -> (i32, i32) {
    %c0_i32 = arith.constant 0 : i32
    return %arg0, %arg2 : i32, i32
  }
  func.func @transform_1(%arg0: i32, %arg1: i32, %arg2: i32) -> (i32, i32) {
    %c0_i32 = arith.constant 0 : i32
    return %arg2, %arg1 : i32, i32
  }
  func.func @transform_2(%arg0: i32, %arg1: i32, %arg2: i32) -> (i32, i32) {
    %c0_i32 = arith.constant 0 : i32
    %c0_i32_0 = arith.constant 0 : i32
    return %c0_i32, %arg1 : i32, i32
  }
  func.func @transform_3(%arg0: i32, %arg1: i32, %arg2: i32) -> (i32, i32) {
    %c0_i32 = arith.constant 0 : i32
    return %arg0, %arg1 : i32, i32
  }
}

module attributes {stable_mosaic.version = 11 : i64} {
  func.func @_loss_kernel(%arg0: i32, %arg1: memref<16x128xf32, #tpu.memory_space<vmem>>, %arg2: memref<16x128xf32, #tpu.memory_space<vmem>>, %arg3: memref<2x16xf32, #tpu.memory_space<vmem>>, %arg4: memref<2x16xf32, #tpu.memory_space<vmem>>, %arg5: memref<1x1xf32, #tpu.memory_space<vmem>>, %arg6: memref<1x1xf32, #tpu.memory_space<vmem>>, %arg7: memref<1x1xf32, #tpu.memory_space<vmem>>) attributes {dimension_semantics = [#tpu.dimension_semantics<arbitrary>], iteration_bounds = array<i64: 1>, scalar_prefetch = 0 : i64, scratch_operands = 1 : i64, tpu.core_type = #tpu.core_type<tc>, window_params = [{transform_indices = @transform_0, window_bounds = array<i64: 16, 128>}, {transform_indices = @transform_1, window_bounds = array<i64: 16, 128>}, {pipeline_mode = #tpu.pipeline_mode<synchronous>, transform_indices = @transform_2, window_bounds = array<i64: 2, 16>}, {pipeline_mode = #tpu.pipeline_mode<synchronous>, transform_indices = @transform_3, window_bounds = array<i64: 2, 16>}, {pipeline_mode = #tpu.pipeline_mode<synchronous>, transform_indices = @transform_4, window_bounds = array<i64: 1, 1>}, {pipeline_mode = #tpu.pipeline_mode<synchronous>, transform_indices = @transform_5, window_bounds = array<i64: 1, 1>}]} {
    %c0_i32 = arith.constant 0 : i32
    %0 = arith.cmpi eq, %arg0, %c0_i32 : i32
    %1 = arith.extui %0 : i1 to i32
    %c0_i32_0 = arith.constant 0 : i32
    %2 = arith.cmpi ne, %1, %c0_i32_0 : i32
    scf.if %2 {
      %cst_10 = arith.constant 0.000000e+00 : f32
      %18 = vector.broadcast %cst_10 : f32 to vector<1x1xf32>
      %c0_11 = arith.constant 0 : index
      %c0_12 = arith.constant 0 : index
      %19 = vector.load %arg7[%c0_11, %c0_12] : memref<1x1xf32, #tpu.memory_space<vmem>>, vector<1x1xf32>
      tpu.vector_store %arg7[%c0_11, %c0_12], %18 {strides = array<i32>} : memref<1x1xf32, #tpu.memory_space<vmem>>, vector<1x1xf32>,
    } else {
    }
    %c0 = arith.constant 0 : index
    %c0_1 = arith.constant 0 : index
    %3 = vector.load %arg1[%c0, %c0_1] : memref<16x128xf32, #tpu.memory_space<vmem>>, vector<16x128xf32>
    %c0_2 = arith.constant 0 : index
    %c0_3 = arith.constant 0 : index
    %4 = vector.load %arg2[%c0_2, %c0_3] : memref<16x128xf32, #tpu.memory_space<vmem>>, vector<16x128xf32>
    %5 = arith.subf %3, %4 : vector<16x128xf32>
    %c0_4 = arith.constant 0 : index
    %c0_5 = arith.constant 0 : index
    %6 = vector.load %arg7[%c0_4, %c0_5] : memref<1x1xf32, #tpu.memory_space<vmem>>, vector<1x1xf32>
    %7 = arith.mulf %5, %5 : vector<16x128xf32>
    %8 = vector.shape_cast %7 : vector<16x128xf32> to vector<1x16x128xf32>
    %cst = arith.constant dense<0.000000e+00> : vector<1xf32>
    %9 = vector.multi_reduction <add>, %8, %cst [1, 2] : vector<1x16x128xf32> to vector<1xf32>
    %10 = vector.shape_cast %9 : vector<1xf32> to vector<1x1x1xf32>
    %11 = vector.extract %10[0, 0, 0] : f32 from vector<1x1x1xf32>
    %12 = vector.broadcast %11 : f32 to vector<1x1xf32>
    %13 = arith.addf %6, %12 : vector<1x1xf32>
    %c0_6 = arith.constant 0 : index
    %c0_7 = arith.constant 0 : index
    %14 = vector.load %arg7[%c0_6, %c0_7] : memref<1x1xf32, #tpu.memory_space<vmem>>, vector<1x1xf32>
    tpu.vector_store %arg7[%c0_6, %c0_7], %13 {strides = array<i32>} : memref<1x1xf32, #tpu.memory_space<vmem>>, vector<1x1xf32>,
    %c0_i32_8 = arith.constant 0 : i32
    %15 = arith.cmpi eq, %arg0, %c0_i32_8 : i32
    %16 = arith.extui %15 : i1 to i32
    %c0_i32_9 = arith.constant 0 : i32
    %17 = arith.cmpi ne, %16, %c0_i32_9 : i32
    scf.if %17 {
      %c0_10 = arith.constant 0 : index
      %c0_11 = arith.constant 0 : index
      %18 = vector.load %arg7[%c0_10, %c0_11] : memref<1x1xf32, #tpu.memory_space<vmem>>, vector<1x1xf32>
      %c0_12 = arith.constant 0 : index
      %c0_13 = arith.constant 0 : index
      %19 = vector.load %arg5[%c0_12, %c0_13] : memref<1x1xf32, #tpu.memory_space<vmem>>, vector<1x1xf32>
      tpu.vector_store %arg5[%c0_12, %c0_13], %18 {strides = array<i32>} : memref<1x1xf32, #tpu.memory_space<vmem>>, vector<1x1xf32>,
      %c0_14 = arith.constant 0 : index
      %c0_15 = arith.constant 0 : index
      %20 = vector.load %arg3[%c0_14, %c0_15] : memref<2x16xf32, #tpu.memory_space<vmem>>, vector<2x16xf32>
      %c0_16 = arith.constant 0 : index
      %c0_17 = arith.constant 0 : index
      %21 = vector.load %arg4[%c0_16, %c0_17] : memref<2x16xf32, #tpu.memory_space<vmem>>, vector<2x16xf32>
      %22 = arith.mulf %20, %20 : vector<2x16xf32>
      %23 = math.exp %21 : vector<2x16xf32>
      %24 = arith.addf %22, %23 : vector<2x16xf32>
      %cst_18 = arith.constant 1.000000e+00 : f32
      %25 = vector.broadcast %cst_18 : f32 to vector<2x16xf32>
      %26 = arith.subf %24, %25 : vector<2x16xf32>
      %27 = arith.subf %26, %21 : vector<2x16xf32>
      %28 = vector.shape_cast %27 : vector<2x16xf32> to vector<1x2x16xf32>
      %cst_19 = arith.constant dense<0.000000e+00> : vector<1xf32>
      %29 = vector.multi_reduction <add>, %28, %cst_19 [1, 2] : vector<1x2x16xf32> to vector<1xf32>
      %30 = vector.shape_cast %29 : vector<1xf32> to vector<1x1x1xf32>
      %31 = vector.extract %30[0, 0, 0] : f32 from vector<1x1x1xf32>
      %32 = vector.broadcast %31 : f32 to vector<1x1xf32>
      %cst_20 = arith.constant 5.000000e-01 : f32
      %33 = vector.broadcast %cst_20 : f32 to vector<1x1xf32>
      %34 = arith.mulf %33, %32 : vector<1x1xf32>
      %c0_21 = arith.constant 0 : index
      %c0_22 = arith.constant 0 : index
      %35 = vector.load %arg6[%c0_21, %c0_22] : memref<1x1xf32, #tpu.memory_space<vmem>>, vector<1x1xf32>
      tpu.vector_store %arg6[%c0_21, %c0_22], %34 {strides = array<i32>} : memref<1x1xf32, #tpu.memory_space<vmem>>, vector<1x1xf32>,
    } else {
    }
    return
  }
  func.func @transform_0(%arg0: i32) -> (i32, i32) {
    %c0_i32 = arith.constant 0 : i32
    %c0_i32_0 = arith.constant 0 : i32
    return %arg0, %c0_i32 : i32, i32
  }
  func.func @transform_1(%arg0: i32) -> (i32, i32) {
    %c0_i32 = arith.constant 0 : i32
    %c0_i32_0 = arith.constant 0 : i32
    return %arg0, %c0_i32 : i32, i32
  }
  func.func @transform_2(%arg0: i32) -> (i32, i32) {
    %c0_i32 = arith.constant 0 : i32
    %c0_i32_0 = arith.constant 0 : i32
    %c0_i32_1 = arith.constant 0 : i32
    return %c0_i32, %c0_i32_0 : i32, i32
  }
  func.func @transform_3(%arg0: i32) -> (i32, i32) {
    %c0_i32 = arith.constant 0 : i32
    %c0_i32_0 = arith.constant 0 : i32
    %c0_i32_1 = arith.constant 0 : i32
    return %c0_i32, %c0_i32_0 : i32, i32
  }
  func.func @transform_4(%arg0: i32) -> (i32, i32) {
    %c0_i32 = arith.constant 0 : i32
    %c0_i32_0 = arith.constant 0 : i32
    %c0_i32_1 = arith.constant 0 : i32
    return %c0_i32, %c0_i32_0 : i32, i32
  }
  func.func @transform_5(%arg0: i32) -> (i32, i32) {
    %c0_i32 = arith.constant 0 : i32
    %c0_i32_0 = arith.constant 0 : i32
    %c0_i32_1 = arith.constant 0 : i32
    return %c0_i32, %c0_i32_0 : i32, i32
  }
}

</mosaic_0001>

<bundles_post_ra>
// kernel: vanilla_vae_forward.24
= control target key start
LH: loop header
LB: loop body
LE: loop exit
PB: predicated region body
PF: predicated region fallthrough
CT: control target
= control target key end

     0   :  { %s602_s1 = inlined_call_operand.vmem [shape: bf16[128,128], index: 1, kind: input, shape index: {}]   ;;  %s603_s0 = inlined_call_operand.vmem [shape: bf16[128,128], index: 0, kind: input, shape index: {}]   ;;  %s604_s2 = inlined_call_operand.vmem [shape: f32[1,128], index: 2, kind: input, shape index: {}]   ;;  %s605_s3 = inlined_call_operand.vmem [shape: f32[128,128], index: 3, kind: output, shape index: {}]  }
   0x1   :  { %v467_v0 = vld [vmem:[%s602_s1] sm:$0xff]   ;;  %v468_v1 = vld [vmem:[%s602_s1 + $0x8] sm:$0xff]   ;;  %v469_v2 = vld [vmem:[%s602_s1 + $0x10] sm:$0xff]  }
   0x2   :  { %419 = vmatprep.subr.bf16.mxu0 %v467_v0  ;;  %451 = vmatprep.subr.bf16.mxu1 %v467_v0  ;;  %v470_v3 = vld [vmem:[%s602_s1 + $0x18] sm:$0xff]   ;;  %v475_v4 = vld [vmem:[%s603_s0] sm:$0xff]   ;;  %v472_v7 = vld [vmem:[%s602_s1 + $0x28] sm:$0xff]  }
   0x3   :  { %420 = vmatpush3.bf16.msra.mxu0 %v467_v0  ;;  %459 = vmatpush3.bf16.msra.mxu1 %v467_v0  ;;  %v476_v5 = vld [vmem:[%s603_s0 + $0x20] sm:$0xff]   ;;  %v473_v8 = vld [vmem:[%s602_s1 + $0x30] sm:$0xff]   ;;  %v474_v9 = vld [vmem:[%s602_s1 + $0x38] sm:$0xff]  }
   0x4   :  { %421 = vmatprep.subr.bf16.mxu0 %v468_v1  ;;  %452 = vmatprep.subr.bf16.mxu1 %v468_v1  ;;  %v471_v6 = vld [vmem:[%s602_s1 + $0x20] sm:$0xff]   ;;  %v477_v10 = vld [vmem:[%s603_s0 + $0x8] sm:$0xff]   ;;  %v479_v12 = vld [vmem:[%s603_s0 + $0x10] sm:$0xff]  }
   0x5   :  { %435 = vmatprep.mubr.bf16.mxu0 %v475_v4  ;;  %443 = vmatprep.mubr.bf16.mxu1 %v476_v5  ;;  %v478_v11 = vld [vmem:[%s603_s0 + $0x28] sm:$0xff]   ;;  %v480_v13 = vld [vmem:[%s603_s0 + $0x30] sm:$0xff]   ;;  %v481_v14 = vld [vmem:[%s603_s0 + $0x18] sm:$0xff]  }
   0x6   :  { %v482_v15 = vld [vmem:[%s603_s0 + $0x38] sm:$0xff]   ;;  %v402_v16 = vld [vmem:[%s604_s2] ss:$0 sm:$0xff] }
   0x7   :  { %422 = vmatpush3.bf16.msra.mxu0 %v468_v1  ;;  %460 = vmatpush3.bf16.msra.mxu1 %v468_v1 }
   0x8   :  { %423 = vmatprep.subr.bf16.mxu0 %v469_v2  ;;  %453 = vmatprep.subr.bf16.mxu1 %v469_v2 }
   0xb   :  { %424 = vmatpush3.bf16.msra.mxu0 %v469_v2  ;;  %461 = vmatpush3.bf16.msra.mxu1 %v469_v2 }
   0xc   :  { %425 = vmatprep.subr.bf16.mxu0 %v470_v3  ;;  %454 = vmatprep.subr.bf16.mxu1 %v470_v3 }
   0xf   :  { %426 = vmatpush3.bf16.msra.mxu0 %v470_v3  ;;  %462 = vmatpush3.bf16.msra.mxu1 %v470_v3 }
  0x10   :  { %427 = vmatprep.subr.bf16.mxu0 %v471_v6  ;;  %455 = vmatprep.subr.bf16.mxu1 %v471_v6 }
  0x13   :  { %428 = vmatpush3.bf16.msra.mxu0 %v471_v6  ;;  %463 = vmatpush3.bf16.msra.mxu1 %v471_v6 }
  0x14   :  { %429 = vmatprep.subr.bf16.mxu0 %v472_v7  ;;  %456 = vmatprep.subr.bf16.mxu1 %v472_v7 }
  0x17   :  { %430 = vmatpush3.bf16.msra.mxu0 %v472_v7  ;;  %464 = vmatpush3.bf16.msra.mxu1 %v472_v7 }
  0x18   :  { %431 = vmatprep.subr.bf16.mxu0 %v473_v8  ;;  %457 = vmatprep.subr.bf16.mxu1 %v473_v8 }
  0x1b   :  { %432 = vmatpush3.bf16.msra.mxu0 %v473_v8  ;;  %465 = vmatpush3.bf16.msra.mxu1 %v473_v8 }
  0x1c   :  { %433 = vmatprep.subr.bf16.mxu0 %v474_v9  ;;  %458 = vmatprep.subr.bf16.mxu1 %v474_v9 }
  0x1f   :  { %434 = vmatpush3.bf16.msra.mxu0 %v474_v9  ;;  %466 = vmatpush3.bf16.msra.mxu1 %v474_v9 }
  0x22   :  { %436 = vmatmul.mubr.bf16.vlgmr.msra.gmra.mrb[0].mxu0 %v477_v10  ;;  %444 = vmatmul.mubr.bf16.vlgmr.msra.gmra.mrb[0].mxu1 %v478_v11 }
  0x23   :  { %439 = vmatprep.mubr.bf16.mxu0 %v479_v12  ;;  %447 = vmatprep.mubr.bf16.mxu1 %v480_v13 }
  0x2a   :  { %440 = vmatmul.mubr.bf16.gmra.mrb[4].mxu0 %v481_v14  ;;  %448 = vmatmul.mubr.bf16.gmra.mrb[4].mxu1 %v482_v15 }
  0xf5   :  { %v437_v17 = vpop.f32.mrb[0].mxu0  ;;  %v445_v18 = vpop.f32.mrb[0].mxu1 }
  0xf6   :  { %v336_v19 = vadd.f32 %v437_v17, %v402_v16  ;;  %v344_v20 = vadd.f32 %v445_v18, %v402_v16  ;;  %v213_v21 = vpop.f32.mrb[1].mxu0  ;;  %v245_v22 = vpop.f32.mrb[1].mxu1 }
  0xf7   :  { %v334_v23 = vadd.f32 %v402_v16, %v213_v21  ;;  %v342_v24 = vadd.f32 %v402_v16, %v245_v22  ;;  %v438_v25 = vpop.f32.mrb[2].mxu0  ;;  %v446_v26 = vpop.f32.mrb[2].mxu1 }
  0xf8   :  { %v352_v27 = vmax.f32 %v336_v19, 0.0  ;;  %v360_v28 = vmax.f32 %v344_v20, 0.0  ;;  %v337_v29 = vadd.f32 %v438_v25, %v402_v16  ;;  %v345_v30 = vadd.f32 %v446_v26, %v402_v16  ;;  %v216_v31 = vpop.f32.mrb[3].mxu0  ;;  %v248_v32 = vpop.f32.mrb[3].mxu1 }
  0xf9   :  { %v350_v33 = vmax.f32 %v334_v23, 0.0  ;;  %v358_v34 = vmax.f32 %v342_v24, 0.0  ;;  %v335_v35 = vadd.f32 %v402_v16, %v216_v31  ;;  %v343_v36 = vadd.f32 %v402_v16, %v248_v32 }
  0xfa   :  { %368 = vst [vmem:[%s605_s3 + $0x10] sm:$0xff] %v352_v27  ;;  %376 = vst [vmem:[%s605_s3 + $0x50] sm:$0xff] %v360_v28  ;;  %v353_v37 = vmax.f32 %v337_v29, 0.0  ;;  %v361_v38 = vmax.f32 %v345_v30, 0.0 }
  0xfb   :  { %366 = vst [vmem:[%s605_s3] sm:$0xff] %v350_v33  ;;  %374 = vst [vmem:[%s605_s3 + $0x40] sm:$0xff] %v358_v34  ;;  %v351_v39 = vmax.f32 %v335_v35, 0.0  ;;  %v359_v40 = vmax.f32 %v343_v36, 0.0 }
  0xfc   :  { %369 = vst [vmem:[%s605_s3 + $0x18] sm:$0xff] %v353_v37  ;;  %377 = vst [vmem:[%s605_s3 + $0x58] sm:$0xff] %v361_v38 }
  0xfd   :  { %367 = vst [vmem:[%s605_s3 + $0x8] sm:$0xff] %v351_v39  ;;  %375 = vst [vmem:[%s605_s3 + $0x48] sm:$0xff] %v359_v40  ;;  %v441_v41 = vpop.f32.mrb[4].mxu0  ;;  %v449_v42 = vpop.f32.mrb[4].mxu1 }
  0xfe   :  { %v340_v43 = vadd.f32 %v441_v41, %v402_v16  ;;  %v348_v44 = vadd.f32 %v449_v42, %v402_v16  ;;  %v229_v45 = vpop.f32.mrb[5].mxu0  ;;  %v261_v46 = vpop.f32.mrb[5].mxu1 }
  0xff   :  { %v338_v47 = vadd.f32 %v402_v16, %v229_v45  ;;  %v346_v48 = vadd.f32 %v402_v16, %v261_v46  ;;  %v442_v49 = vpop.f32.mrb[6].mxu0  ;;  %v450_v50 = vpop.f32.mrb[6].mxu1 }
 0x100   :  { %v356_v51 = vmax.f32 %v340_v43, 0.0  ;;  %v364_v52 = vmax.f32 %v348_v44, 0.0  ;;  %v341_v53 = vadd.f32 %v442_v49, %v402_v16  ;;  %v349_v54 = vadd.f32 %v450_v50, %v402_v16  ;;  %v232_v55 = vpop.f32.mrb[7].mxu0  ;;  %v264_v56 = vpop.f32.mrb[7].mxu1 }
 0x101   :  { %v354_v57 = vmax.f32 %v338_v47, 0.0  ;;  %v362_v58 = vmax.f32 %v346_v48, 0.0  ;;  %v339_v59 = vadd.f32 %v402_v16, %v232_v55  ;;  %v347_v60 = vadd.f32 %v402_v16, %v264_v56 }
 0x102   :  { %372 = vst [vmem:[%s605_s3 + $0x30] sm:$0xff] %v356_v51  ;;  %380 = vst [vmem:[%s605_s3 + $0x70] sm:$0xff] %v364_v52  ;;  %v357_v61 = vmax.f32 %v341_v53, 0.0  ;;  %v365_v62 = vmax.f32 %v349_v54, 0.0 }
 0x103   :  { %370 = vst [vmem:[%s605_s3 + $0x20] sm:$0xff] %v354_v57  ;;  %378 = vst [vmem:[%s605_s3 + $0x60] sm:$0xff] %v362_v58  ;;  %v355_v63 = vmax.f32 %v339_v59, 0.0  ;;  %v363_v0 = vmax.f32 %v347_v60, 0.0 }
 0x104   :  { %373 = vst [vmem:[%s605_s3 + $0x38] sm:$0xff] %v357_v61  ;;  %381 = vst [vmem:[%s605_s3 + $0x78] sm:$0xff] %v365_v62 }
 0x105   :  { %371 = vst [vmem:[%s605_s3 + $0x28] sm:$0xff] %v355_v63  ;;  %379 = vst [vmem:[%s605_s3 + $0x68] sm:$0xff] %v363_v0 }

// kernel: vanilla_vae_forward.25
= control target key start
LH: loop header
LB: loop body
LE: loop exit
PB: predicated region body
PF: predicated region fallthrough
CT: control target
= control target key end

     0   :  { %s448_s1 = inlined_call_operand.vmem [shape: bf16[256,128], index: 1, kind: input, shape index: {}]   ;;  %s449_s0 = inlined_call_operand.vmem [shape: bf16[32,256], index: 0, kind: input, shape index: {}]   ;;  %s450_s2 = inlined_call_operand.vmem [shape: f32[1,128], index: 2, kind: input, shape index: {}]   ;;  %s451_s3 = inlined_call_operand.vmem [shape: f32[32,128], index: 3, kind: output, shape index: {}]  }
   0x1   :  { %v331_v0 = vld [vmem:[%s448_s1 + $0x40] sm:$0xff]   ;;  %v333_v2 = vld [vmem:[%s448_s1 + $0x48] sm:$0xff]   ;;  %v335_v4 = vld [vmem:[%s448_s1 + $0x50] sm:$0xff]  }
   0x2   :  { %v332_v1 = vld [vmem:[%s448_s1] sm:$0xff]   ;;  %287 = vmatprep.subr.bf16.mxu0 %v331_v0  ;;  %315 = vmatprep.subr.bf16.mxu1 %v331_v0  ;;  %v334_v3 = vld [vmem:[%s448_s1 + $0x8] sm:$0xff]   ;;  %v336_v5 = vld [vmem:[%s448_s1 + $0x10] sm:$0xff]  }
   0x3   :  { %288 = vmatpush3.bf16.msra.mxu0 %v332_v1  ;;  %323 = vmatpush3.bf16.msra.mxu1 %v332_v1  ;;  %v337_v6 = vld [vmem:[%s448_s1 + $0x58] sm:$0xff]   ;;  %v339_v8 = vld [vmem:[%s448_s1 + $0x60] sm:$0xff]   ;;  %v341_v10 = vld [vmem:[%s448_s1 + $0x68] sm:$0xff]  }
   0x4   :  { %289 = vmatprep.subr.bf16.mxu0 %v333_v2  ;;  %316 = vmatprep.subr.bf16.mxu1 %v333_v2  ;;  %v338_v7 = vld [vmem:[%s448_s1 + $0x18] sm:$0xff]   ;;  %v340_v9 = vld [vmem:[%s448_s1 + $0x20] sm:$0xff]   ;;  %v342_v13 = vld [vmem:[%s448_s1 + $0x28] sm:$0xff]  }
   0x5   :  { %v349_v11 = vld [vmem:[%s449_s0 + $0x4] ss:$8 sps:$4 sm:$0xff]   ;;  %v352_v12 = vld [vmem:[%s449_s0 + $0x14] ss:$8 sps:$4 sm:$0xff]   ;;  %v347_v18 = vld [vmem:[%s449_s0] ss:$8 sps:$4 sm:$0xff]  }
   0x6   :  { %v343_v14 = vld [vmem:[%s448_s1 + $0x70] sm:$0xff]   ;;  %211 = vmatprep.mubr.bf16.mxu0 %v349_v11  ;;  %219 = vmatprep.mubr.bf16.mxu1 %v352_v12  ;;  %v345_v16 = vld [vmem:[%s448_s1 + $0x78] sm:$0xff]   ;;  %v286_v23 = vld [vmem:[%s450_s2] ss:$0 sm:$0xff] }
   0x7   :  { %290 = vmatpush3.bf16.msra.mxu0 %v334_v3  ;;  %324 = vmatpush3.bf16.msra.mxu1 %v334_v3  ;;  %v344_v15 = vld [vmem:[%s448_s1 + $0x30] sm:$0xff]   ;;  %v346_v17 = vld [vmem:[%s448_s1 + $0x38] sm:$0xff]  }
   0x8   :  { %291 = vmatprep.subr.bf16.mxu0 %v335_v4  ;;  %317 = vmatprep.subr.bf16.mxu1 %v335_v4  ;;  %v350_v19 = vld [vmem:[%s449_s0 + $0x10] ss:$8 sps:$4 sm:$0xff]  }
   0xb   :  { %292 = vmatpush3.bf16.msra.mxu0 %v336_v5  ;;  %325 = vmatpush3.bf16.msra.mxu1 %v336_v5 }
   0xc   :  { %293 = vmatprep.subr.bf16.mxu0 %v337_v6  ;;  %318 = vmatprep.subr.bf16.mxu1 %v337_v6 }
   0xf   :  { %294 = vmatpush3.bf16.msra.mxu0 %v338_v7  ;;  %326 = vmatpush3.bf16.msra.mxu1 %v338_v7 }
  0x10   :  { %295 = vmatprep.subr.bf16.mxu0 %v339_v8  ;;  %319 = vmatprep.subr.bf16.mxu1 %v339_v8 }
  0x13   :  { %296 = vmatpush3.bf16.msra.mxu0 %v340_v9  ;;  %327 = vmatpush3.bf16.msra.mxu1 %v340_v9 }
  0x14   :  { %297 = vmatprep.subr.bf16.mxu0 %v341_v10  ;;  %320 = vmatprep.subr.bf16.mxu1 %v341_v10 }
  0x17   :  { %298 = vmatpush3.bf16.msra.mxu0 %v342_v13  ;;  %328 = vmatpush3.bf16.msra.mxu1 %v342_v13 }
  0x18   :  { %299 = vmatprep.subr.bf16.mxu0 %v343_v14  ;;  %321 = vmatprep.subr.bf16.mxu1 %v343_v14 }
  0x1b   :  { %300 = vmatpush3.bf16.msra.mxu0 %v344_v15  ;;  %329 = vmatpush3.bf16.msra.mxu1 %v344_v15 }
  0x1c   :  { %301 = vmatprep.subr.bf16.mxu0 %v345_v16  ;;  %322 = vmatprep.subr.bf16.mxu1 %v345_v16 }
  0x1f   :  { %302 = vmatpush3.bf16.msra.mxu0 %v346_v17  ;;  %330 = vmatpush3.bf16.msra.mxu1 %v346_v17 }
  0x22   :  { %212 = vmatmul.mubr.bf16.vlgmr.msra.gmra.mrb[0].mxu0 %v347_v18  ;;  %220 = vmatmul.mubr.bf16.vlgmr.msra.gmra.mrb[0].mxu1 %v350_v19 }
  0xf5   :  { %v303_v20 = vpop.f32.mrb[0].mxu0  ;;  %v309_v21 = vpop.f32.mrb[0].mxu1 }
  0xf6   :  { %v304_v22 = vpop.f32.mrb[1].mxu0  ;;  %v310_v24 = vpop.f32.mrb[1].mxu1 }
  0xf7   :  { %v305_v25 = vadd.f32 %v304_v22, %v303_v20  ;;  %v311_v26 = vadd.f32 %v310_v24, %v309_v21  ;;  %v306_v27 = vpop.f32.mrb[2].mxu0  ;;  %v312_v28 = vpop.f32.mrb[2].mxu1 }
  0xf8   :  { %v307_v29 = vpop.f32.mrb[3].mxu0  ;;  %v313_v30 = vpop.f32.mrb[3].mxu1 }
  0xf9   :  { %v250_v31 = vadd.f32 %v305_v25, %v286_v23  ;;  %v252_v32 = vadd.f32 %v311_v26, %v286_v23  ;;  %v308_v33 = vadd.f32 %v307_v29, %v306_v27  ;;  %v314_v34 = vadd.f32 %v313_v30, %v312_v28 }
  0xfb   :  { %v254_v35 = vmax.f32 %v250_v31, 0.0  ;;  %v256_v36 = vmax.f32 %v252_v32, 0.0  ;;  %v251_v37 = vadd.f32 %v308_v33, %v286_v23  ;;  %v253_v38 = vadd.f32 %v314_v34, %v286_v23 }
  0xfd   :  { %258 = vst [vmem:[%s451_s3] sm:$0xff] %v254_v35  ;;  %260 = vst [vmem:[%s451_s3 + $0x10] sm:$0xff] %v256_v36  ;;  %v255_v39 = vmax.f32 %v251_v37, 0.0  ;;  %v257_v40 = vmax.f32 %v253_v38, 0.0 }
  0xff   :  { %259 = vst [vmem:[%s451_s3 + $0x8] sm:$0xff] %v255_v39  ;;  %261 = vst [vmem:[%s451_s3 + $0x18] sm:$0xff] %v257_v40 }

// kernel: vanilla_vae_forward.26
= control target key start
LH: loop header
LB: loop body
LE: loop exit
PB: predicated region body
PF: predicated region fallthrough
CT: control target
= control target key end

     0   :  { %s757_s12 = smov 0   ;;  %s759_s13 = smov 0   ;;  %s856_s0 = inlined_call_operand.vmem [shape: bf16[32,384], index: 0, kind: input, shape index: {}]   ;;  %s857_s1 = inlined_call_operand.vmem [shape: bf16[384,128], index: 1, kind: input, shape index: {}]   ;;  %s858_s2 = inlined_call_operand.vmem [shape: f32[1,128], index: 2, kind: input, shape index: {}]   ;;  %s859_s3 = inlined_call_operand.vmem [shape: f32[32,128], index: 3, kind: output, shape index: {}]  }
   0x1   :  { %s761_s14 = smov 0   ;;  %s763_s15 = smov 0  }
   0x2   :  { %s765_s16 = smov 0  }
   0x3 LB: > { %s25_s17 = sadd.s32 1, %s730_s15  ;;  %p48_p1 = scmp.ne.s32.totalorder %s722_s13, %s718_s12  ;;  %s734_s16 = sphi %s765_s16, %s13_s16   ;;  %s730_s15 = sphi %s763_s15, %s863_s15   ;;  %s726_s14 = sphi %s761_s14, %s862_s14   ;;  %s722_s13 = sphi %s759_s13, %s861_s13   ;;  %s718_s12 = sphi %s757_s12, %s860_s12  }
   0x4   : > { %p26_p0 = scmp.ge.s32.totalorder %s25_s17, 3  ;;  %p49_p2 = scmp.eq.s32.totalorder %s734_s16, 0 }
   0x5   : > { %s41_s19 = sadd.s32 1, %s722_s13  ;;  %p591_p5 = scmp.ge.s32.totalorder %s734_s16, 3 }
   0x6   : > { %s865_s17 = smov (%p26_p0, %s25_s17), 0  ;;  %p50_p3 = por %p49_p2, %p48_p1 }
   0x7   : > { %s37_s18 = ssub.s32 %s730_s15, %s865_s17  ;;  %162 = sbr.rel (%p591_p5) target bundleno = 21 (0x15), region = 20 }
   0x8   : > { %p39_p4 = scmp.eq.s32.totalorder %s37_s18, 0 }
   0xa   : > { %s792_s20 = scalar_select %p39_p4, %s722_s13, %s41_s19  }
   0xe   : > { %165 = sbr.rel (!%p50_p3) target bundleno = 21 (0x15), region = 24  ;;  %s167_s21 = sand.u32 (%p50_p3), 1, %s722_s13  }
   0xf   : > { %s593_s22 = sshll.u32 (%p50_p3), %s730_s15, 2  ;;  %s592_s23 = sshll.u32 (%p50_p3), %s167_s21, 4 }
  0x10   : > { %s174_s26 = scalar_lea.vmem (%p50_p3), %s856_s0, %s593_s22  ;;  %s169_s27 = scalar_lea.vmem (%p50_p3), [#allocation3], %s592_s23 }
  0x11   : > { %v190_v0 = vld [vmem:[%s174_s26] sm:$0xf] (%p50_p3)  ;;  %v192_v1 = vld [vmem:[%s174_s26 + $0xc] sm:$0xf] (%p50_p3)  ;;  %v194_v2 = vld [vmem:[%s174_s26 + $0x18] sm:$0xf] (%p50_p3) }
  0x12   : > { %191 = vst [vmem:[%s169_s27] sm:$0xf] (%p50_p3), %v190_v0  ;;  %193 = vst [vmem:[%s169_s27 + $0x4] sm:$0xf] (%p50_p3), %v192_v1  ;;  %v196_v3 = vld [vmem:[%s174_s26 + $0x24] sm:$0xf] (%p50_p3) }
  0x13   : > { %195 = vst [vmem:[%s169_s27 + $0x8] sm:$0xf] (%p50_p3), %v194_v2  ;;  %197 = vst [vmem:[%s169_s27 + $0xc] sm:$0xf] (%p50_p3), %v196_v3 }
  0x15 PF: > { %p594_p6 = scmp.ge.s32.totalorder %s734_s16, 1  ;;  %p239_p7 = scmp.lt.s32.totalorder %s734_s16, 4 }
  0x17   : > { %p240_p8 = pnand %p594_p6, %p239_p7 }
  0x18   : > { %s246_s28 = sand.u32 (!%p240_p8), 1, %s718_s12   ;;  %s596_s29 = sshll.u32 (!%p240_p8), %s726_s14, 4 }
  0x19   : > { %243 = sbr.rel (%p240_p8) target bundleno = 300 (0x12c), region = 69  ;;  %s804_s30 = sshll.u32 (!%p240_p8), %s246_s28, 4 }
  0x1a   : > { %p285_p9 = scmp.lt.s32.totalorder (!%p240_p8), %s596_s29, 47  ;;  %s248_s8 = scalar_lea.vmem (!%p240_p8), [#allocation3], %s804_s30 }
  0x1b   : > { %p598_p10 = scmp.ne.s32.totalorder (!%p240_p8), %s726_s14, 0 }
  0x20   : > { %s867_s29 = smov (!%p285_p9, %s596_s29), 47  ;;  %309 = sbr.rel (%p598_p10) target bundleno = 39 (0x27), region = 77 }
  0x21   : > { %s597_s4 = sshll.u32 %s867_s29, 2  ;;  %v736_v4 = vmov (!%p598_p10), 0.0  }
  0x22   : > { %s809_s7 = scalar_lea.vmem %s857_s1, %s597_s4  ;;  %310 = vst [vmem:[#allocation2] sm:$0xff] (!%p598_p10), %v736_v4  ;;  %311 = vst [vmem:[#allocation2 + $0x8] sm:$0xff] (!%p598_p10), %v736_v4 }
  0x23   : > { %312 = vst [vmem:[#allocation2 + $0x10] sm:$0xff] (!%p598_p10), %v736_v4  ;;  %313 = vst [vmem:[#allocation2 + $0x18] sm:$0xff] (!%p598_p10), %v736_v4 }
  0x27 PF: > { %v686_v5 = vld [vmem:[%s809_s7] sm:$0xff]   ;;  %v687_v6 = vld [vmem:[%s809_s7 + $0x8] sm:$0xff]   ;;  %v688_v7 = vld [vmem:[%s809_s7 + $0x10] sm:$0xff]   ;;  %p609_p11 = scmp.ne.s32.totalorder %s726_s14, 2 }
  0x28   : > { %625 = vmatprep.subr.bf16.mxu0 %v686_v5  ;;  %v689_v8 = vld [vmem:[%s809_s7 + $0x18] sm:$0xff]   ;;  %v694_v9 = vld [vmem:[%s248_s8] sm:$0xff]   ;;  %v691_v11 = vld [vmem:[%s809_s7 + $0x28] sm:$0xff]  }
  0x29   : > { %626 = vmatpush3.bf16.msra.mxu0 %v686_v5  ;;  %641 = vmatprep.mubr.bf16.mxu0 %v694_v9  ;;  %v690_v10 = vld [vmem:[%s809_s7 + $0x20] sm:$0xff]   ;;  %v692_v12 = vld [vmem:[%s809_s7 + $0x30] sm:$0xff]   ;;  %v693_v13 = vld [vmem:[%s809_s7 + $0x38] sm:$0xff]  }
  0x2a   : > { %627 = vmatprep.subr.bf16.mxu0 %v687_v6  ;;  %v695_v14 = vld [vmem:[%s248_s8 + $0x8] sm:$0xff]   ;;  %v316_v15 = vld [vmem:[#allocation2 + $0x10] sm:$0xff]  ;;  %v314_v16 = vld [vmem:[#allocation2] sm:$0xff] }
  0x2b   : > { %v317_v18 = vld [vmem:[#allocation2 + $0x18] sm:$0xff]  ;;  %v315_v21 = vld [vmem:[#allocation2 + $0x8] sm:$0xff]  ;;  %v610_v28 = vld [vmem:[%s858_s2] ss:$0 sm:$0xff] (!%p609_p11) }
  0x2d   : > { %628 = vmatpush3.bf16.msra.mxu0 %v687_v6 }
  0x2e   : > { %629 = vmatprep.subr.bf16.mxu0 %v688_v7 }
  0x31   : > { %630 = vmatpush3.bf16.msra.mxu0 %v688_v7 }
  0x32   : > { %631 = vmatprep.subr.bf16.mxu0 %v689_v8 }
  0x35   : > { %632 = vmatpush3.bf16.msra.mxu0 %v689_v8 }
  0x36   : > { %633 = vmatprep.subr.bf16.mxu0 %v690_v10 }
  0x39   : > { %634 = vmatpush3.bf16.msra.mxu0 %v690_v10 }
  0x3a   : > { %635 = vmatprep.subr.bf16.mxu0 %v691_v11 }
  0x3d   : > { %636 = vmatpush3.bf16.msra.mxu0 %v691_v11 }
  0x3e   : > { %637 = vmatprep.subr.bf16.mxu0 %v692_v12 }
  0x41   : > { %638 = vmatpush3.bf16.msra.mxu0 %v692_v12 }
  0x42   : > { %639 = vmatprep.subr.bf16.mxu0 %v693_v13 }
  0x45   : > { %640 = vmatpush3.bf16.msra.mxu0 %v693_v13 }
  0x48   : > { %642 = vmatmul.mubr.bf16.vlgmr.msra.gmra.mrb[0].mxu0 %v695_v14 }
 0x11b   : > { %v643_v17 = vpop.f32.mrb[0].mxu0  ;;  %458 = sbr.rel (%p609_p11) target bundleno = 300 (0x12c), region = 81 }
 0x11c   : > { %v449_v19 = vadd.f32 %v643_v17, %v316_v15  ;;  %v432_v20 = vpop.f32.mrb[1].mxu0 }
 0x11d   : > { %v447_v22 = vadd.f32 %v432_v20, %v314_v16  ;;  %v644_v23 = vpop.f32.mrb[2].mxu0 }
 0x11e   : > { %453 = vst [vmem:[#allocation2 + $0x10] sm:$0xff] %v449_v19  ;;  %v450_v24 = vadd.f32 %v644_v23, %v317_v18  ;;  %v435_v25 = vpop.f32.mrb[3].mxu0 }
 0x11f   : > { %451 = vst [vmem:[#allocation2] sm:$0xff] %v447_v22  ;;  %v448_v26 = vadd.f32 %v435_v25, %v315_v21 }
 0x120   : > { %454 = vst [vmem:[#allocation2 + $0x18] sm:$0xff] %v450_v24 }
 0x121   : > { %452 = vst [vmem:[#allocation2 + $0x8] sm:$0xff] %v448_v26 }
 0x125   : > { %v461_v32 = vld [vmem:[#allocation2 + $0x10] sm:$0xff] }
 0x126   : > { %v459_v27 = vld [vmem:[#allocation2] sm:$0xff]  ;;  %v472_v34 = vadd.f32 %v610_v28, %v461_v32 }
 0x127   : > { %v470_v30 = vadd.f32 %v610_v28, %v459_v27  ;;  %v462_v33 = vld [vmem:[#allocation2 + $0x18] sm:$0xff] }
 0x128   : > { %v460_v29 = vld [vmem:[#allocation2 + $0x8] sm:$0xff]  ;;  %v473_v35 = vadd.f32 %v610_v28, %v462_v33  ;;  %476 = vst [vmem:[%s859_s3 + $0x10] sm:$0xff] %v472_v34 }
 0x129   : > { %v471_v31 = vadd.f32 %v610_v28, %v460_v29  ;;  %474 = vst [vmem:[%s859_s3] sm:$0xff] %v470_v30 }
 0x12a   : > { %477 = vst [vmem:[%s859_s3 + $0x18] sm:$0xff] %v473_v35 }
 0x12b   : > { %475 = vst [vmem:[%s859_s3 + $0x8] sm:$0xff] %v471_v31 }
 0x12c PF: > { %s13_s16 = sadd.s32 1, %s734_s16   ;;  %s860_s12 = smov %s722_s13 }
 0x12d   : > { %p10_p12 = scmp.ge.s32.totalorder %s13_s16, 5   ;;  %s861_s13 = smov %s792_s20 }
 0x12e   : > { %s862_s14 = smov %s730_s15  ;;  %s863_s15 = smov %s865_s17 }
 0x12f   :  { %12 = sbr.rel (!%p10_p12) target bundleno = 3 (0x3), region = 122 }

// kernel: vanilla_vae_forward.27
= control target key start
LH: loop header
LB: loop body
LE: loop exit
PB: predicated region body
PF: predicated region fallthrough
CT: control target
= control target key end

     0   :  { %s761_s12 = smov 0   ;;  %s763_s13 = smov 0   ;;  %s860_s0 = inlined_call_operand.vmem [shape: bf16[32,384], index: 0, kind: input, shape index: {}]   ;;  %s861_s1 = inlined_call_operand.vmem [shape: bf16[384,128], index: 1, kind: input, shape index: {}]   ;;  %s862_s2 = inlined_call_operand.vmem [shape: f32[1,128], index: 2, kind: input, shape index: {}]   ;;  %s863_s3 = inlined_call_operand.vmem [shape: f32[32,128], index: 3, kind: output, shape index: {}]  }
   0x1   :  { %s765_s14 = smov 0   ;;  %s767_s15 = smov 0  }
   0x2   :  { %s769_s16 = smov 0  }
   0x3 LB: > { %s25_s17 = sadd.s32 1, %s734_s15  ;;  %p48_p1 = scmp.ne.s32.totalorder %s726_s13, %s722_s12  ;;  %s738_s16 = sphi %s769_s16, %s13_s16   ;;  %s734_s15 = sphi %s767_s15, %s867_s15   ;;  %s730_s14 = sphi %s765_s14, %s866_s14   ;;  %s726_s13 = sphi %s763_s13, %s865_s13   ;;  %s722_s12 = sphi %s761_s12, %s864_s12  }
   0x4   : > { %p26_p0 = scmp.ge.s32.totalorder %s25_s17, 3  ;;  %p49_p2 = scmp.eq.s32.totalorder %s738_s16, 0 }
   0x5   : > { %s41_s19 = sadd.s32 1, %s726_s13  ;;  %p595_p5 = scmp.ge.s32.totalorder %s738_s16, 3 }
   0x6   : > { %s869_s17 = smov (%p26_p0, %s25_s17), 0  ;;  %p50_p3 = por %p49_p2, %p48_p1 }
   0x7   : > { %s37_s18 = ssub.s32 %s734_s15, %s869_s17  ;;  %162 = sbr.rel (%p595_p5) target bundleno = 21 (0x15), region = 20 }
   0x8   : > { %p39_p4 = scmp.eq.s32.totalorder %s37_s18, 0 }
   0xa   : > { %s796_s20 = scalar_select %p39_p4, %s726_s13, %s41_s19  }
   0xe   : > { %165 = sbr.rel (!%p50_p3) target bundleno = 21 (0x15), region = 24  ;;  %s167_s21 = sand.u32 (%p50_p3), 1, %s726_s13  }
   0xf   : > { %s597_s22 = sshll.u32 (%p50_p3), %s734_s15, 2  ;;  %s596_s23 = sshll.u32 (%p50_p3), %s167_s21, 4 }
  0x10   : > { %s174_s26 = scalar_lea.vmem (%p50_p3), %s860_s0, %s597_s22  ;;  %s169_s27 = scalar_lea.vmem (%p50_p3), [#allocation3], %s596_s23 }
  0x11   : > { %v190_v0 = vld [vmem:[%s174_s26] sm:$0xf] (%p50_p3)  ;;  %v192_v1 = vld [vmem:[%s174_s26 + $0xc] sm:$0xf] (%p50_p3)  ;;  %v194_v2 = vld [vmem:[%s174_s26 + $0x18] sm:$0xf] (%p50_p3) }
  0x12   : > { %191 = vst [vmem:[%s169_s27] sm:$0xf] (%p50_p3), %v190_v0  ;;  %193 = vst [vmem:[%s169_s27 + $0x4] sm:$0xf] (%p50_p3), %v192_v1  ;;  %v196_v3 = vld [vmem:[%s174_s26 + $0x24] sm:$0xf] (%p50_p3) }
  0x13   : > { %195 = vst [vmem:[%s169_s27 + $0x8] sm:$0xf] (%p50_p3), %v194_v2  ;;  %197 = vst [vmem:[%s169_s27 + $0xc] sm:$0xf] (%p50_p3), %v196_v3 }
  0x15 PF: > { %p598_p6 = scmp.ge.s32.totalorder %s738_s16, 1  ;;  %p239_p7 = scmp.lt.s32.totalorder %s738_s16, 4 }
  0x17   : > { %p240_p8 = pnand %p598_p6, %p239_p7 }
  0x18   : > { %s246_s28 = sand.u32 (!%p240_p8), 1, %s722_s12   ;;  %s600_s29 = sshll.u32 (!%p240_p8), %s730_s14, 4 }
  0x19   : > { %243 = sbr.rel (%p240_p8) target bundleno = 302 (0x12e), region = 69  ;;  %s808_s30 = sshll.u32 (!%p240_p8), %s246_s28, 4 }
  0x1a   : > { %p285_p9 = scmp.lt.s32.totalorder (!%p240_p8), %s600_s29, 47  ;;  %s248_s8 = scalar_lea.vmem (!%p240_p8), [#allocation3], %s808_s30 }
  0x1b   : > { %p602_p10 = scmp.ne.s32.totalorder (!%p240_p8), %s730_s14, 0 }
  0x20   : > { %s871_s29 = smov (!%p285_p9, %s600_s29), 47  ;;  %309 = sbr.rel (%p602_p10) target bundleno = 39 (0x27), region = 77 }
  0x21   : > { %s601_s4 = sshll.u32 %s871_s29, 2  ;;  %v740_v4 = vmov (!%p602_p10), 0.0  }
  0x22   : > { %s813_s7 = scalar_lea.vmem %s861_s1, %s601_s4  ;;  %310 = vst [vmem:[#allocation2] sm:$0xff] (!%p602_p10), %v740_v4  ;;  %311 = vst [vmem:[#allocation2 + $0x8] sm:$0xff] (!%p602_p10), %v740_v4 }
  0x23   : > { %312 = vst [vmem:[#allocation2 + $0x10] sm:$0xff] (!%p602_p10), %v740_v4  ;;  %313 = vst [vmem:[#allocation2 + $0x18] sm:$0xff] (!%p602_p10), %v740_v4 }
  0x27 PF: > { %v690_v5 = vld [vmem:[%s813_s7] sm:$0xff]   ;;  %v691_v6 = vld [vmem:[%s813_s7 + $0x8] sm:$0xff]   ;;  %v692_v7 = vld [vmem:[%s813_s7 + $0x10] sm:$0xff]   ;;  %p613_p11 = scmp.ne.s32.totalorder %s730_s14, 2 }
  0x28   : > { %629 = vmatprep.subr.bf16.mxu0 %v690_v5  ;;  %v693_v8 = vld [vmem:[%s813_s7 + $0x18] sm:$0xff]   ;;  %v698_v9 = vld [vmem:[%s248_s8] sm:$0xff]   ;;  %v695_v11 = vld [vmem:[%s813_s7 + $0x28] sm:$0xff]  }
  0x29   : > { %630 = vmatpush3.bf16.msra.mxu0 %v690_v5  ;;  %645 = vmatprep.mubr.bf16.mxu0 %v698_v9  ;;  %v694_v10 = vld [vmem:[%s813_s7 + $0x20] sm:$0xff]   ;;  %v696_v12 = vld [vmem:[%s813_s7 + $0x30] sm:$0xff]   ;;  %v697_v13 = vld [vmem:[%s813_s7 + $0x38] sm:$0xff]  }
  0x2a   : > { %631 = vmatprep.subr.bf16.mxu0 %v691_v6  ;;  %v699_v14 = vld [vmem:[%s248_s8 + $0x8] sm:$0xff]   ;;  %v316_v15 = vld [vmem:[#allocation2 + $0x10] sm:$0xff]  ;;  %v314_v16 = vld [vmem:[#allocation2] sm:$0xff] }
  0x2b   : > { %v317_v18 = vld [vmem:[#allocation2 + $0x18] sm:$0xff]  ;;  %v315_v21 = vld [vmem:[#allocation2 + $0x8] sm:$0xff]  ;;  %v614_v28 = vld [vmem:[%s862_s2] ss:$0 sm:$0xff] (!%p613_p11) }
  0x2d   : > { %632 = vmatpush3.bf16.msra.mxu0 %v691_v6 }
  0x2e   : > { %633 = vmatprep.subr.bf16.mxu0 %v692_v7 }
  0x31   : > { %634 = vmatpush3.bf16.msra.mxu0 %v692_v7 }
  0x32   : > { %635 = vmatprep.subr.bf16.mxu0 %v693_v8 }
  0x35   : > { %636 = vmatpush3.bf16.msra.mxu0 %v693_v8 }
  0x36   : > { %637 = vmatprep.subr.bf16.mxu0 %v694_v10 }
  0x39   : > { %638 = vmatpush3.bf16.msra.mxu0 %v694_v10 }
  0x3a   : > { %639 = vmatprep.subr.bf16.mxu0 %v695_v11 }
  0x3d   : > { %640 = vmatpush3.bf16.msra.mxu0 %v695_v11 }
  0x3e   : > { %641 = vmatprep.subr.bf16.mxu0 %v696_v12 }
  0x41   : > { %642 = vmatpush3.bf16.msra.mxu0 %v696_v12 }
  0x42   : > { %643 = vmatprep.subr.bf16.mxu0 %v697_v13 }
  0x45   : > { %644 = vmatpush3.bf16.msra.mxu0 %v697_v13 }
  0x48   : > { %646 = vmatmul.mubr.bf16.vlgmr.msra.gmra.mrb[0].mxu0 %v699_v14 }
 0x11b   : > { %v647_v17 = vpop.f32.mrb[0].mxu0  ;;  %458 = sbr.rel (%p613_p11) target bundleno = 302 (0x12e), region = 81 }
 0x11c   : > { %v449_v19 = vadd.f32 %v647_v17, %v316_v15  ;;  %v432_v20 = vpop.f32.mrb[1].mxu0 }
 0x11d   : > { %v447_v22 = vadd.f32 %v432_v20, %v314_v16  ;;  %v648_v23 = vpop.f32.mrb[2].mxu0 }
 0x11e   : > { %453 = vst [vmem:[#allocation2 + $0x10] sm:$0xff] %v449_v19  ;;  %v450_v24 = vadd.f32 %v648_v23, %v317_v18  ;;  %v435_v25 = vpop.f32.mrb[3].mxu0 }
 0x11f   : > { %451 = vst [vmem:[#allocation2] sm:$0xff] %v447_v22  ;;  %v448_v26 = vadd.f32 %v435_v25, %v315_v21 }
 0x120   : > { %454 = vst [vmem:[#allocation2 + $0x18] sm:$0xff] %v450_v24 }
 0x121   : > { %452 = vst [vmem:[#allocation2 + $0x8] sm:$0xff] %v448_v26 }
 0x125   : > { %v461_v32 = vld [vmem:[#allocation2 + $0x10] sm:$0xff] }
 0x126   : > { %v459_v27 = vld [vmem:[#allocation2] sm:$0xff]  ;;  %v472_v34 = vadd.f32 %v614_v28, %v461_v32 }
 0x127   : > { %v470_v30 = vadd.f32 %v614_v28, %v459_v27  ;;  %v462_v33 = vld [vmem:[#allocation2 + $0x18] sm:$0xff] }
 0x128   : > { %v460_v29 = vld [vmem:[#allocation2 + $0x8] sm:$0xff]  ;;  %v473_v35 = vadd.f32 %v614_v28, %v462_v33  ;;  %v476_v38 = vmax.f32 %v472_v34, 0.0 }
 0x129   : > { %v471_v31 = vadd.f32 %v614_v28, %v460_v29  ;;  %v474_v36 = vmax.f32 %v470_v30, 0.0 }
 0x12a   : > { %v477_v39 = vmax.f32 %v473_v35, 0.0  ;;  %480 = vst [vmem:[%s863_s3 + $0x10] sm:$0xff] %v476_v38 }
 0x12b   : > { %v475_v37 = vmax.f32 %v471_v31, 0.0  ;;  %478 = vst [vmem:[%s863_s3] sm:$0xff] %v474_v36 }
 0x12c   : > { %481 = vst [vmem:[%s863_s3 + $0x18] sm:$0xff] %v477_v39 }
 0x12d   : > { %479 = vst [vmem:[%s863_s3 + $0x8] sm:$0xff] %v475_v37 }
 0x12e PF: > { %s13_s16 = sadd.s32 1, %s738_s16   ;;  %s864_s12 = smov %s726_s13 }
 0x12f   : > { %p10_p12 = scmp.ge.s32.totalorder %s13_s16, 5   ;;  %s865_s13 = smov %s796_s20 }
 0x130   : > { %s866_s14 = smov %s734_s15  ;;  %s867_s15 = smov %s869_s17 }
 0x131   :  { %12 = sbr.rel (!%p10_p12) target bundleno = 3 (0x3), region = 122 }

// kernel: vanilla_vae_forward.28
= control target key start
LH: loop header
LB: loop body
LE: loop exit
PB: predicated region body
PF: predicated region fallthrough
CT: control target
= control target key end

     0   :  { %s306_s1 = inlined_call_operand.vmem [shape: bf16[128,128], index: 1, kind: input, shape index: {}]   ;;  %s307_s0 = inlined_call_operand.vmem [shape: bf16[32,128], index: 0, kind: input, shape index: {}]   ;;  %s308_s2 = inlined_call_operand.vmem [shape: f32[1,128], index: 2, kind: input, shape index: {}]   ;;  %s309_s3 = inlined_call_operand.vmem [shape: f32[32,128], index: 3, kind: output, shape index: {}]  }
   0x1   :  { %v231_v0 = vld [vmem:[%s306_s1] sm:$0xff]   ;;  %v232_v1 = vld [vmem:[%s306_s1 + $0x8] sm:$0xff]   ;;  %v233_v2 = vld [vmem:[%s306_s1 + $0x10] sm:$0xff]  }
   0x2   :  { %211 = vmatprep.subr.bf16.mxu0 %v231_v0  ;;  %v234_v3 = vld [vmem:[%s306_s1 + $0x18] sm:$0xff]   ;;  %v239_v4 = vld [vmem:[%s307_s0] sm:$0xff]   ;;  %v236_v6 = vld [vmem:[%s306_s1 + $0x28] sm:$0xff]  }
   0x3   :  { %212 = vmatpush3.bf16.msra.mxu0 %v231_v0  ;;  %227 = vmatprep.mubr.bf16.mxu0 %v239_v4  ;;  %v235_v5 = vld [vmem:[%s306_s1 + $0x20] sm:$0xff]   ;;  %v237_v7 = vld [vmem:[%s306_s1 + $0x30] sm:$0xff]   ;;  %v238_v8 = vld [vmem:[%s306_s1 + $0x38] sm:$0xff]  }
   0x4   :  { %213 = vmatprep.subr.bf16.mxu0 %v232_v1  ;;  %v240_v9 = vld [vmem:[%s307_s0 + $0x8] sm:$0xff]   ;;  %v200_v10 = vld [vmem:[%s308_s2] ss:$0 sm:$0xff] }
   0x7   :  { %214 = vmatpush3.bf16.msra.mxu0 %v232_v1 }
   0x8   :  { %215 = vmatprep.subr.bf16.mxu0 %v233_v2 }
   0xb   :  { %216 = vmatpush3.bf16.msra.mxu0 %v233_v2 }
   0xc   :  { %217 = vmatprep.subr.bf16.mxu0 %v234_v3 }
   0xf   :  { %218 = vmatpush3.bf16.msra.mxu0 %v234_v3 }
  0x10   :  { %219 = vmatprep.subr.bf16.mxu0 %v235_v5 }
  0x13   :  { %220 = vmatpush3.bf16.msra.mxu0 %v235_v5 }
  0x14   :  { %221 = vmatprep.subr.bf16.mxu0 %v236_v6 }
  0x17   :  { %222 = vmatpush3.bf16.msra.mxu0 %v236_v6 }
  0x18   :  { %223 = vmatprep.subr.bf16.mxu0 %v237_v7 }
  0x1b   :  { %224 = vmatpush3.bf16.msra.mxu0 %v237_v7 }
  0x1c   :  { %225 = vmatprep.subr.bf16.mxu0 %v238_v8 }
  0x1f   :  { %226 = vmatpush3.bf16.msra.mxu0 %v238_v8 }
  0x22   :  { %228 = vmatmul.mubr.bf16.vlgmr.msra.gmra.mrb[0].mxu0 %v240_v9 }
  0xf5   :  { %v229_v11 = vpop.f32.mrb[0].mxu0 }
  0xf6   :  { %v180_v12 = vadd.f32 %v229_v11, %v200_v10  ;;  %v141_v13 = vpop.f32.mrb[1].mxu0 }
  0xf7   :  { %v178_v14 = vadd.f32 %v200_v10, %v141_v13  ;;  %v230_v15 = vpop.f32.mrb[2].mxu0 }
  0xf8   :  { %184 = vst [vmem:[%s309_s3 + $0x10] sm:$0xff] %v180_v12  ;;  %v181_v16 = vadd.f32 %v230_v15, %v200_v10  ;;  %v144_v17 = vpop.f32.mrb[3].mxu0 }
  0xf9   :  { %182 = vst [vmem:[%s309_s3] sm:$0xff] %v178_v14  ;;  %v179_v18 = vadd.f32 %v200_v10, %v144_v17 }
  0xfa   :  { %185 = vst [vmem:[%s309_s3 + $0x18] sm:$0xff] %v181_v16 }
  0xfb   :  { %183 = vst [vmem:[%s309_s3 + $0x8] sm:$0xff] %v179_v18 }

// kernel: vanilla_vae_forward.31
= control target key start
LH: loop header
LB: loop body
LE: loop exit
PB: predicated region body
PF: predicated region fallthrough
CT: control target
= control target key end

     0   :  { %s310_s1 = inlined_call_operand.vmem [shape: bf16[128,128], index: 1, kind: input, shape index: {}]   ;;  %s311_s0 = inlined_call_operand.vmem [shape: bf16[32,128], index: 0, kind: input, shape index: {}]   ;;  %s312_s2 = inlined_call_operand.vmem [shape: f32[1,128], index: 2, kind: input, shape index: {}]   ;;  %s313_s3 = inlined_call_operand.vmem [shape: f32[32,128], index: 3, kind: output, shape index: {}]  }
   0x1   :  { %v235_v0 = vld [vmem:[%s310_s1] sm:$0xff]   ;;  %v236_v1 = vld [vmem:[%s310_s1 + $0x8] sm:$0xff]   ;;  %v237_v2 = vld [vmem:[%s310_s1 + $0x10] sm:$0xff]  }
   0x2   :  { %215 = vmatprep.subr.bf16.mxu0 %v235_v0  ;;  %v238_v3 = vld [vmem:[%s310_s1 + $0x18] sm:$0xff]   ;;  %v243_v4 = vld [vmem:[%s311_s0] sm:$0xff]   ;;  %v240_v6 = vld [vmem:[%s310_s1 + $0x28] sm:$0xff]  }
   0x3   :  { %216 = vmatpush3.bf16.msra.mxu0 %v235_v0  ;;  %231 = vmatprep.mubr.bf16.mxu0 %v243_v4  ;;  %v239_v5 = vld [vmem:[%s310_s1 + $0x20] sm:$0xff]   ;;  %v241_v7 = vld [vmem:[%s310_s1 + $0x30] sm:$0xff]   ;;  %v242_v8 = vld [vmem:[%s310_s1 + $0x38] sm:$0xff]  }
   0x4   :  { %217 = vmatprep.subr.bf16.mxu0 %v236_v1  ;;  %v244_v9 = vld [vmem:[%s311_s0 + $0x8] sm:$0xff]   ;;  %v204_v10 = vld [vmem:[%s312_s2] ss:$0 sm:$0xff] }
   0x7   :  { %218 = vmatpush3.bf16.msra.mxu0 %v236_v1 }
   0x8   :  { %219 = vmatprep.subr.bf16.mxu0 %v237_v2 }
   0xb   :  { %220 = vmatpush3.bf16.msra.mxu0 %v237_v2 }
   0xc   :  { %221 = vmatprep.subr.bf16.mxu0 %v238_v3 }
   0xf   :  { %222 = vmatpush3.bf16.msra.mxu0 %v238_v3 }
  0x10   :  { %223 = vmatprep.subr.bf16.mxu0 %v239_v5 }
  0x13   :  { %224 = vmatpush3.bf16.msra.mxu0 %v239_v5 }
  0x14   :  { %225 = vmatprep.subr.bf16.mxu0 %v240_v6 }
  0x17   :  { %226 = vmatpush3.bf16.msra.mxu0 %v240_v6 }
  0x18   :  { %227 = vmatprep.subr.bf16.mxu0 %v241_v7 }
  0x1b   :  { %228 = vmatpush3.bf16.msra.mxu0 %v241_v7 }
  0x1c   :  { %229 = vmatprep.subr.bf16.mxu0 %v242_v8 }
  0x1f   :  { %230 = vmatpush3.bf16.msra.mxu0 %v242_v8 }
  0x22   :  { %232 = vmatmul.mubr.bf16.vlgmr.msra.gmra.mrb[0].mxu0 %v244_v9 }
  0xf5   :  { %v233_v11 = vpop.f32.mrb[0].mxu0 }
  0xf6   :  { %v180_v12 = vadd.f32 %v233_v11, %v204_v10  ;;  %v141_v13 = vpop.f32.mrb[1].mxu0 }
  0xf7   :  { %v178_v14 = vadd.f32 %v204_v10, %v141_v13  ;;  %v234_v15 = vpop.f32.mrb[2].mxu0 }
  0xf8   :  { %v184_v16 = vmax.f32 %v180_v12, 0.0  ;;  %v181_v17 = vadd.f32 %v234_v15, %v204_v10  ;;  %v144_v18 = vpop.f32.mrb[3].mxu0 }
  0xf9   :  { %v182_v19 = vmax.f32 %v178_v14, 0.0  ;;  %v179_v20 = vadd.f32 %v204_v10, %v144_v18 }
  0xfa   :  { %188 = vst [vmem:[%s313_s3 + $0x10] sm:$0xff] %v184_v16  ;;  %v185_v21 = vmax.f32 %v181_v17, 0.0 }
  0xfb   :  { %186 = vst [vmem:[%s313_s3] sm:$0xff] %v182_v19  ;;  %v183_v22 = vmax.f32 %v179_v20, 0.0 }
  0xfc   :  { %189 = vst [vmem:[%s313_s3 + $0x18] sm:$0xff] %v185_v21 }
  0xfd   :  { %187 = vst [vmem:[%s313_s3 + $0x8] sm:$0xff] %v183_v22 }

// kernel: vanilla_vae_forward.33
= control target key start
LH: loop header
LB: loop body
LE: loop exit
PB: predicated region body
PF: predicated region fallthrough
CT: control target
= control target key end

     0   :  { %s800_s12 = smov 0   ;;  %s802_s13 = smov 0   ;;  %s889_s0 = inlined_call_operand.vmem [shape: bf16[8,128], index: 0, kind: input, shape index: {}]   ;;  %s890_s1 = inlined_call_operand.vmem [shape: bf16[128,512], index: 1, kind: input, shape index: {}]   ;;  %s891_s2 = inlined_call_operand.vmem [shape: f32[1,512], index: 2, kind: input, shape index: {}]   ;;  %s892_s3 = inlined_call_operand.vmem [shape: f32[8,512], index: 3, kind: output, shape index: {}]  }
   0x1   :  { %s804_s14 = smov 0   ;;  %s806_s15 = smov 0  }
   0x2   :  { %s808_s16 = smov 0  }
   0x3 LB: > { %s28_s17 = sadd.s32 1, %s773_s15  ;;  %p76_p1 = scmp.ne.s32.totalorder %s765_s13, %s761_s12  ;;  %s777_s16 = sphi %s808_s16, %s13_s16   ;;  %s773_s15 = sphi %s806_s15, %s896_s15   ;;  %s769_s14 = sphi %s804_s14, %s895_s14   ;;  %s765_s13 = sphi %s802_s13, %s894_s13   ;;  %s761_s12 = sphi %s800_s12, %s893_s12  }
   0x4   : > { %p30_p0 = scmp.ge.s32.totalorder %s28_s17, 2  ;;  %p77_p2 = scmp.eq.s32.totalorder %s777_s16, 0 }
   0x5   : > { %s69_s19 = sadd.s32 1, %s765_s13  ;;  %p646_p5 = scmp.ge.s32.totalorder %s777_s16, 2 }
   0x6   : > { %s898_s17 = smov (%p30_p0, %s28_s17), 0  ;;  %p78_p3 = por %p77_p2, %p76_p1 }
   0x7   : > { %s65_s18 = ssub.s32 %s773_s15, %s898_s17  ;;  %166 = sbr.rel (%p646_p5) target bundleno = 26 (0x1a), region = 20 }
   0x8   : > { %p67_p4 = scmp.eq.s32.totalorder %s65_s18, 0 }
   0xa   : > { %s835_s20 = scalar_select %p67_p4, %s765_s13, %s69_s19  }
   0xe   : > { %169 = sbr.rel (!%p78_p3) target bundleno = 26 (0x1a), region = 24  ;;  %s171_s21 = sand.u32 (%p78_p3), 1, %s765_s13  }
   0xf   : > { %s673_s22 = sshll.u32 (%p78_p3), %s773_s15, 3  ;;  %s647_s23 = sshll.u32 (%p78_p3), %s171_s21, 7 }
  0x10   : > { %s843_s26 = scalar_lea.vmem (%p78_p3), %s890_s1, %s673_s22  ;;  %s173_s27 = scalar_lea.vmem (%p78_p3), [#allocation3], %s647_s23 }
  0x11   : > { %v237_v0 = vld [vmem:[%s843_s26] sm:$0xff] (%p78_p3)  ;;  %v239_v1 = vld [vmem:[%s843_s26 + $0x10] sm:$0xff] (%p78_p3) }
  0x12   : > { %v241_v2 = vld [vmem:[%s843_s26 + $0x20] sm:$0xff] (%p78_p3)  ;;  %238 = vst [vmem:[%s173_s27] sm:$0xff] (%p78_p3), %v237_v0  ;;  %240 = vst [vmem:[%s173_s27 + $0x8] sm:$0xff] (%p78_p3), %v239_v1  ;;  %v243_v3 = vld [vmem:[%s843_s26 + $0x30] sm:$0xff] (%p78_p3) }
  0x13   : > { %242 = vst [vmem:[%s173_s27 + $0x10] sm:$0xff] (%p78_p3), %v241_v2  ;;  %v245_v4 = vld [vmem:[%s843_s26 + $0x40] sm:$0xff] (%p78_p3)  ;;  %v247_v5 = vld [vmem:[%s843_s26 + $0x50] sm:$0xff] (%p78_p3)  ;;  %244 = vst [vmem:[%s173_s27 + $0x18] sm:$0xff] (%p78_p3), %v243_v3 }
  0x14   : > { %246 = vst [vmem:[%s173_s27 + $0x20] sm:$0xff] (%p78_p3), %v245_v4  ;;  %248 = vst [vmem:[%s173_s27 + $0x28] sm:$0xff] (%p78_p3), %v247_v5  ;;  %v249_v6 = vld [vmem:[%s843_s26 + $0x60] sm:$0xff] (%p78_p3)  ;;  %v251_v7 = vld [vmem:[%s843_s26 + $0x70] sm:$0xff] (%p78_p3) }
  0x15   : > { %v253_v8 = vld [vmem:[%s843_s26 + $0x80] sm:$0xff]  ;;  %250 = vst [vmem:[%s173_s27 + $0x30] sm:$0xff] %v249_v6  ;;  %252 = vst [vmem:[%s173_s27 + $0x38] sm:$0xff] %v251_v7  ;;  %v255_v9 = vld [vmem:[%s843_s26 + $0x90] sm:$0xff] }
  0x16   : > { %254 = vst [vmem:[%s173_s27 + $0x40] sm:$0xff] %v253_v8  ;;  %v257_v10 = vld [vmem:[%s843_s26 + $0xa0] sm:$0xff]  ;;  %v259_v11 = vld [vmem:[%s843_s26 + $0xb0] sm:$0xff]  ;;  %256 = vst [vmem:[%s173_s27 + $0x48] sm:$0xff] %v255_v9 }
  0x17   : > { %258 = vst [vmem:[%s173_s27 + $0x50] sm:$0xff] %v257_v10  ;;  %260 = vst [vmem:[%s173_s27 + $0x58] sm:$0xff] %v259_v11  ;;  %v261_v12 = vld [vmem:[%s843_s26 + $0xc0] sm:$0xff]  ;;  %v263_v13 = vld [vmem:[%s843_s26 + $0xd0] sm:$0xff] }
  0x18   : > { %v265_v14 = vld [vmem:[%s843_s26 + $0xe0] sm:$0xff]  ;;  %262 = vst [vmem:[%s173_s27 + $0x60] sm:$0xff] %v261_v12  ;;  %264 = vst [vmem:[%s173_s27 + $0x68] sm:$0xff] %v263_v13  ;;  %v267_v15 = vld [vmem:[%s843_s26 + $0xf0] sm:$0xff] }
  0x19   : > { %266 = vst [vmem:[%s173_s27 + $0x70] sm:$0xff] %v265_v14  ;;  %268 = vst [vmem:[%s173_s27 + $0x78] sm:$0xff] %v267_v15 }
  0x1a PF: > { %p650_p6 = scmp.ge.s32.totalorder %s777_s16, 1  ;;  %p281_p7 = scmp.lt.s32.totalorder %s777_s16, 3 }
  0x1c   : > { %p282_p8 = pnand %p650_p6, %p281_p7 }
  0x1d   : > { %s288_s28 = sand.u32 (!%p282_p8), 1, %s761_s12   ;;  %v779_v16 = vmov (!%p282_p8), 0   ;;  %v359_v33 = vld [vmem:[%s889_s0] sm:$0xf] (!%p282_p8)  ;;  %s652_s6 = sshll.u32 (!%p282_p8), %s769_s14, 1  ;;  %v508_v34 = vlaneseq (!%p282_p8) }
  0x1e   : > { %285 = sbr.rel (%p282_p8) target bundleno = 281 (0x119), region = 66  ;;  %s651_s29 = sshll.u32 (!%p282_p8), %s288_s28, 7  ;;  %488 = vmatprep.mubr.bf16.mxu0 (!%p282_p8), %v779_v16 }
  0x1f   : > { %s290_s30 = scalar_lea.vmem (!%p282_p8), [#allocation3], %s651_s29  ;;  %p336_p9 = scmp.lt.s32.totalorder (!%p282_p8), %s652_s6, 3  ;;  %v509_v35 = vshrl.u32 (!%p282_p8), %v508_v34, 7 }
  0x20   : > { %v715_v17 = vld [vmem:[%s290_s30 + $0x4] ss:$8 sps:$4 sm:$0xff] (!%p282_p8)   ;;  %v717_v18 = vld [vmem:[%s290_s30] ss:$8 sps:$4 sm:$0xff] (!%p282_p8)   ;;  %v718_v19 = vld [vmem:[%s290_s30 + $0x14] ss:$8 sps:$4 sm:$0xff] (!%p282_p8)  }
  0x21   : > { %456 = vmatprep.subr.bf16.mxu0 (!%p282_p8), %v715_v17  ;;  %v720_v20 = vld [vmem:[%s290_s30 + $0x10] ss:$8 sps:$4 sm:$0xff] (!%p282_p8)   ;;  %v721_v21 = vld [vmem:[%s290_s30 + $0x24] ss:$8 sps:$4 sm:$0xff] (!%p282_p8)   ;;  %v723_v22 = vld [vmem:[%s290_s30 + $0x20] ss:$8 sps:$4 sm:$0xff] (!%p282_p8)  }
  0x22   : > { %457 = vmatpush1.bf16.msra.mxu0 (!%p282_p8), %v717_v18  ;;  %v724_v23 = vld [vmem:[%s290_s30 + $0x34] ss:$8 sps:$4 sm:$0xff] (!%p282_p8)   ;;  %v726_v24 = vld [vmem:[%s290_s30 + $0x30] ss:$8 sps:$4 sm:$0xff] (!%p282_p8)   ;;  %v727_v25 = vld [vmem:[%s290_s30 + $0x44] ss:$8 sps:$4 sm:$0xff] (!%p282_p8)  }
  0x23   : > { %458 = vmatprep.subr.bf16.mxu0 (!%p282_p8), %v718_v19  ;;  %v729_v26 = vld [vmem:[%s290_s30 + $0x40] ss:$8 sps:$4 sm:$0xff] (!%p282_p8)   ;;  %v730_v27 = vld [vmem:[%s290_s30 + $0x54] ss:$8 sps:$4 sm:$0xff] (!%p282_p8)   ;;  %v732_v28 = vld [vmem:[%s290_s30 + $0x50] ss:$8 sps:$4 sm:$0xff] (!%p282_p8)  }
  0x24   : > { %v733_v29 = vld [vmem:[%s290_s30 + $0x64] ss:$8 sps:$4 sm:$0xff] (!%p282_p8)   ;;  %v735_v30 = vld [vmem:[%s290_s30 + $0x60] ss:$8 sps:$4 sm:$0xff] (!%p282_p8)   ;;  %v736_v31 = vld [vmem:[%s290_s30 + $0x74] ss:$8 sps:$4 sm:$0xff] (!%p282_p8)  }
  0x25   : > { %v738_v32 = vld [vmem:[%s290_s30 + $0x70] ss:$8 sps:$4 sm:$0xff]   ;;  %s900_s6 = smov (!%p336_p9, %s652_s6), 3  ;;  %v510_v36 = vsub.s32 0, %v509_v35  ;;  %v514_v38 = vsub.s32 1, %v509_v35 }
  0x26   : > { %459 = vmatpush1.bf16.msra.mxu0 %v720_v20  ;;  %s338_s9 = scalar_lea.vmem %s891_s2, %s900_s6  ;;  %s654_s10 = sshll.u32 %s900_s6, 3 }
  0x27   : > { %460 = vmatprep.subr.bf16.mxu0 %v721_v21  ;;  %v506_v37 = vld [vmem:[%s338_s9] sm:$0x3]  ;;  %s348_s18 = scalar_lea.vmem %s892_s3, %s654_s10 }
  0x28   : > { %v511_v39 = vrot.slane %v506_v37, %v510_v36  ;;  %v515_v40 = vrot.slane %v506_v37, %v514_v38 }
  0x2a   : > { %461 = vmatpush1.bf16.msra.mxu0 %v723_v22 }
  0x2b   : > { %462 = vmatprep.subr.bf16.mxu0 %v724_v23 }
  0x2e   : > { %463 = vmatpush1.bf16.msra.mxu0 %v726_v24 }
  0x2f   : > { %464 = vmatprep.subr.bf16.mxu0 %v727_v25 }
  0x32   : > { %465 = vmatpush1.bf16.msra.mxu0 %v729_v26 }
  0x33   : > { %466 = vmatprep.subr.bf16.mxu0 %v730_v27 }
  0x36   : > { %467 = vmatpush1.bf16.msra.mxu0 %v732_v28 }
  0x37   : > { %468 = vmatprep.subr.bf16.mxu0 %v733_v29 }
  0x3a   : > { %469 = vmatpush1.bf16.msra.mxu0 %v735_v30 }
  0x3b   : > { %470 = vmatprep.subr.bf16.mxu0 %v736_v31 }
  0x3e   : > { %471 = vmatpush1.bf16.msra.mxu0 %v738_v32 }
  0x41   : > { %489 = vmatmul.mubr.bf16.vlgmr.msra.gmra.mrb[0].mxu0 %v359_v33 }
 0x114   : > { %v490_v41 = vpop.f32.mrb[0].mxu0 }
 0x115   : > { %v518_v42 = vadd.f32 %v511_v39, %v490_v41  ;;  %v492_v43 = vpop.f32.mrb[1].mxu0 }
 0x116   : > { %v519_v44 = vadd.f32 %v515_v40, %v492_v43  ;;  %v494_v45 = vpop.f32.mrb[2].mxu0 }
 0x117   : > { %520 = vst [vmem:[%s348_s18] sm:$0xff] %v518_v42  ;;  %v495_v46 = vpop.f32.mrb[3].mxu0 }
 0x118   : > { %521 = vst [vmem:[%s348_s18 + $0x8] sm:$0xff] %v519_v44 }
 0x119 PF: > { %s13_s16 = sadd.s32 1, %s777_s16   ;;  %s893_s12 = smov %s765_s13 }
 0x11a   : > { %p10_p10 = scmp.ge.s32.totalorder %s13_s16, 4   ;;  %s894_s13 = smov %s835_s20 }
 0x11b   : > { %s895_s14 = smov %s773_s15  ;;  %s896_s15 = smov %s898_s17 }
 0x11c   :  { %12 = sbr.rel (!%p10_p10) target bundleno = 3 (0x3), region = 119 }

// kernel: vanilla_vae_forward.32
= control target key start
LH: loop header
LB: loop body
LE: loop exit
PB: predicated region body
PF: predicated region fallthrough
CT: control target
= control target key end

     0   :  { %s637_s1 = inlined_call_operand.vmem [shape: bf16[512,128], index: 1, kind: input, shape index: {}]   ;;  %s638_s0 = inlined_call_operand.vmem [shape: bf16[8,512], index: 0, kind: input, shape index: {}]   ;;  %s639_s2 = inlined_call_operand.vmem [shape: f32[1,128], index: 2, kind: input, shape index: {}]   ;;  %s640_s3 = inlined_call_operand.vmem [shape: f32[8,128], index: 3, kind: output, shape index: {}]  }
   0x1   :  { %v473_v0 = vld [vmem:[%s637_s1 + $0x40] sm:$0xff]   ;;  %v477_v4 = vld [vmem:[%s637_s1 + $0x48] sm:$0xff]   ;;  %v481_v8 = vld [vmem:[%s637_s1 + $0x50] sm:$0xff]  }
   0x2   :  { %v474_v1 = vld [vmem:[%s637_s1 + $0xc0] sm:$0xff]   ;;  %429 = vmatprep.subr.bf16.mxu0 %v473_v0  ;;  %v478_v5 = vld [vmem:[%s637_s1 + $0xc8] sm:$0xff]   ;;  %v482_v9 = vld [vmem:[%s637_s1 + $0xd0] sm:$0xff]  }
   0x3   :  { %v475_v2 = vld [vmem:[%s637_s1] sm:$0xff]   ;;  %451 = vmatprep.subr.bf16.mxu1 %v474_v1  ;;  %v479_v6 = vld [vmem:[%s637_s1 + $0x8] sm:$0xff]   ;;  %v483_v10 = vld [vmem:[%s637_s1 + $0x10] sm:$0xff]  }
   0x4   :  { %v476_v3 = vld [vmem:[%s637_s1 + $0x80] sm:$0xff]   ;;  %430 = vmatpush3.bf16.msra.mxu0 %v475_v2  ;;  %v480_v7 = vld [vmem:[%s637_s1 + $0x88] sm:$0xff]   ;;  %v484_v11 = vld [vmem:[%s637_s1 + $0x90] sm:$0xff]  }
   0x5   :  { %452 = vmatpush3.bf16.msra.mxu1 %v476_v3  ;;  %431 = vmatprep.subr.bf16.mxu0 %v477_v4  ;;  %v485_v12 = vld [vmem:[%s637_s1 + $0x58] sm:$0xff]   ;;  %v489_v16 = vld [vmem:[%s637_s1 + $0x60] sm:$0xff]   ;;  %v493_v20 = vld [vmem:[%s637_s1 + $0x68] sm:$0xff]  }
   0x6   :  { %453 = vmatprep.subr.bf16.mxu1 %v478_v5  ;;  %v486_v13 = vld [vmem:[%s637_s1 + $0xd8] sm:$0xff]   ;;  %v490_v17 = vld [vmem:[%s637_s1 + $0xe0] sm:$0xff]   ;;  %v494_v21 = vld [vmem:[%s637_s1 + $0xe8] sm:$0xff]  }
   0x7   :  { %v487_v14 = vld [vmem:[%s637_s1 + $0x18] sm:$0xff]   ;;  %v491_v18 = vld [vmem:[%s637_s1 + $0x20] sm:$0xff]   ;;  %v495_v22 = vld [vmem:[%s637_s1 + $0x28] sm:$0xff]  }
   0x8   :  { %432 = vmatpush3.bf16.msra.mxu0 %v479_v6  ;;  %v488_v15 = vld [vmem:[%s637_s1 + $0x98] sm:$0xff]   ;;  %v492_v19 = vld [vmem:[%s637_s1 + $0xa0] sm:$0xff]   ;;  %v496_v23 = vld [vmem:[%s637_s1 + $0xa8] sm:$0xff]  }
   0x9   :  { %454 = vmatpush3.bf16.msra.mxu1 %v480_v7  ;;  %433 = vmatprep.subr.bf16.mxu0 %v481_v8  ;;  %v497_v24 = vld [vmem:[%s637_s1 + $0x70] sm:$0xff]   ;;  %v501_v28 = vld [vmem:[%s637_s1 + $0x78] sm:$0xff]   ;;  %v21_v32 = vld [vmem:[%s638_s0] sm:$0xff] }
   0xa   :  { %455 = vmatprep.subr.bf16.mxu1 %v482_v9  ;;  %v498_v25 = vld [vmem:[%s637_s1 + $0xf0] sm:$0xff]   ;;  %v502_v29 = vld [vmem:[%s637_s1 + $0xf8] sm:$0xff]   ;;  %v22_v33 = vld [vmem:[%s638_s0 + $0x8] sm:$0xff]  ;;  %v392_v34 = vcombine.low %v21_v32, %v21_v32  ;;  %v393_v35 = vcombine.high %v21_v32, %v21_v32 }
   0xb   :  { %v499_v26 = vld [vmem:[%s637_s1 + $0x30] sm:$0xff]   ;;  %v503_v30 = vld [vmem:[%s637_s1 + $0x38] sm:$0xff]   ;;  %v394_v36 = vcombine.low %v22_v33, %v22_v33  ;;  %v395_v37 = vcombine.high %v22_v33, %v22_v33  ;;  %v428_v46 = vld [vmem:[%s639_s2] ss:$0 sm:$0xff] }
   0xc   :  { %434 = vmatpush3.bf16.msra.mxu0 %v483_v10  ;;  %v500_v27 = vld [vmem:[%s637_s1 + $0xb0] sm:$0xff]   ;;  %v504_v31 = vld [vmem:[%s637_s1 + $0xb8] sm:$0xff]   ;;  %325 = vmatprep.mubr.bf16.mxu0 %v393_v35 }
   0xd   :  { %456 = vmatpush3.bf16.msra.mxu1 %v484_v11  ;;  %435 = vmatprep.subr.bf16.mxu0 %v485_v12 }
   0xe   :  { %457 = vmatprep.subr.bf16.mxu1 %v486_v13  ;;  %365 = vmatprep.mubr.bf16.mxu1 %v395_v37 }
  0x10   :  { %436 = vmatpush3.bf16.msra.mxu0 %v487_v14 }
  0x11   :  { %458 = vmatpush3.bf16.msra.mxu1 %v488_v15  ;;  %437 = vmatprep.subr.bf16.mxu0 %v489_v16 }
  0x12   :  { %459 = vmatprep.subr.bf16.mxu1 %v490_v17 }
  0x14   :  { %438 = vmatpush3.bf16.msra.mxu0 %v491_v18 }
  0x15   :  { %460 = vmatpush3.bf16.msra.mxu1 %v492_v19  ;;  %439 = vmatprep.subr.bf16.mxu0 %v493_v20 }
  0x16   :  { %461 = vmatprep.subr.bf16.mxu1 %v494_v21 }
  0x18   :  { %440 = vmatpush3.bf16.msra.mxu0 %v495_v22 }
  0x19   :  { %462 = vmatpush3.bf16.msra.mxu1 %v496_v23  ;;  %441 = vmatprep.subr.bf16.mxu0 %v497_v24 }
  0x1a   :  { %463 = vmatprep.subr.bf16.mxu1 %v498_v25 }
  0x1c   :  { %442 = vmatpush3.bf16.msra.mxu0 %v499_v26 }
  0x1d   :  { %464 = vmatpush3.bf16.msra.mxu1 %v500_v27  ;;  %443 = vmatprep.subr.bf16.mxu0 %v501_v28 }
  0x1e   :  { %465 = vmatprep.subr.bf16.mxu1 %v502_v29 }
  0x20   :  { %444 = vmatpush3.bf16.msra.mxu0 %v503_v30 }
  0x21   :  { %466 = vmatpush3.bf16.msra.mxu1 %v504_v31 }
  0x23   :  { %326 = vmatmul.mubr.bf16.vlgmr.msra.gmra.mrb[0].mxu0 %v392_v34 }
  0x24   :  { %366 = vmatmul.mubr.bf16.vlgmr.msra.gmra.mrb[0].mxu1 %v394_v36 }
  0xf6   :  { %v445_v38 = vpop.f32.mrb[0].mxu0 }
  0xf7   :  { %v467_v39 = vpop.f32.mrb[0].mxu1  ;;  %v446_v40 = vpop.f32.mrb[1].mxu0 }
  0xf8   :  { %v468_v41 = vpop.f32.mrb[1].mxu1  ;;  %v447_v42 = vadd.f32 %v446_v40, %v445_v38  ;;  %v448_v44 = vpop.f32.mrb[2].mxu0 }
  0xf9   :  { %v469_v43 = vadd.f32 %v468_v41, %v467_v39  ;;  %v470_v45 = vpop.f32.mrb[2].mxu1  ;;  %v449_v47 = vpop.f32.mrb[3].mxu0 }
  0xfa   :  { %v471_v48 = vpop.f32.mrb[3].mxu1 }
  0xfb   :  { %v368_v49 = vadd.f32 %v469_v43, %v447_v42 }
  0xfd   :  { %v386_v50 = vadd.f32 %v428_v46, %v368_v49 }
  0xff   :  { %387 = vst [vmem:[%s640_s3] sm:$0xff] %v386_v50 }

// kernel: vanilla_vae_forward.43
= control target key start
LH: loop header
LB: loop body
LE: loop exit
PB: predicated region body
PF: predicated region fallthrough
CT: control target
= control target key end

     0   :  { %s586_s1 = inlined_call_operand.vmem [shape: bf16[128,128], index: 1, kind: input, shape index: {}]   ;;  %s587_s0 = inlined_call_operand.vmem [shape: bf16[128,128], index: 0, kind: input, shape index: {}]   ;;  %s588_s2 = inlined_call_operand.vmem [shape: f32[1,128], index: 2, kind: input, shape index: {}]   ;;  %s589_s3 = inlined_call_operand.vmem [shape: f32[128,128], index: 3, kind: output, shape index: {}]  }
   0x1   :  { %v451_v0 = vld [vmem:[%s586_s1] sm:$0xff]   ;;  %v452_v1 = vld [vmem:[%s586_s1 + $0x8] sm:$0xff]   ;;  %v453_v2 = vld [vmem:[%s586_s1 + $0x10] sm:$0xff]  }
   0x2   :  { %403 = vmatprep.subr.bf16.mxu0 %v451_v0  ;;  %435 = vmatprep.subr.bf16.mxu1 %v451_v0  ;;  %v454_v3 = vld [vmem:[%s586_s1 + $0x18] sm:$0xff]   ;;  %v459_v4 = vld [vmem:[%s587_s0] sm:$0xff]   ;;  %v456_v7 = vld [vmem:[%s586_s1 + $0x28] sm:$0xff]  }
   0x3   :  { %404 = vmatpush3.bf16.msra.mxu0 %v451_v0  ;;  %443 = vmatpush3.bf16.msra.mxu1 %v451_v0  ;;  %v460_v5 = vld [vmem:[%s587_s0 + $0x20] sm:$0xff]   ;;  %v457_v8 = vld [vmem:[%s586_s1 + $0x30] sm:$0xff]   ;;  %v458_v9 = vld [vmem:[%s586_s1 + $0x38] sm:$0xff]  }
   0x4   :  { %405 = vmatprep.subr.bf16.mxu0 %v452_v1  ;;  %436 = vmatprep.subr.bf16.mxu1 %v452_v1  ;;  %v455_v6 = vld [vmem:[%s586_s1 + $0x20] sm:$0xff]   ;;  %v461_v10 = vld [vmem:[%s587_s0 + $0x8] sm:$0xff]   ;;  %v463_v12 = vld [vmem:[%s587_s0 + $0x10] sm:$0xff]  }
   0x5   :  { %419 = vmatprep.mubr.bf16.mxu0 %v459_v4  ;;  %427 = vmatprep.mubr.bf16.mxu1 %v460_v5  ;;  %v462_v11 = vld [vmem:[%s587_s0 + $0x28] sm:$0xff]   ;;  %v464_v13 = vld [vmem:[%s587_s0 + $0x30] sm:$0xff]   ;;  %v465_v14 = vld [vmem:[%s587_s0 + $0x18] sm:$0xff]  }
   0x6   :  { %v466_v15 = vld [vmem:[%s587_s0 + $0x38] sm:$0xff]   ;;  %v386_v16 = vld [vmem:[%s588_s2] ss:$0 sm:$0xff] }
   0x7   :  { %406 = vmatpush3.bf16.msra.mxu0 %v452_v1  ;;  %444 = vmatpush3.bf16.msra.mxu1 %v452_v1 }
   0x8   :  { %407 = vmatprep.subr.bf16.mxu0 %v453_v2  ;;  %437 = vmatprep.subr.bf16.mxu1 %v453_v2 }
   0xb   :  { %408 = vmatpush3.bf16.msra.mxu0 %v453_v2  ;;  %445 = vmatpush3.bf16.msra.mxu1 %v453_v2 }
   0xc   :  { %409 = vmatprep.subr.bf16.mxu0 %v454_v3  ;;  %438 = vmatprep.subr.bf16.mxu1 %v454_v3 }
   0xf   :  { %410 = vmatpush3.bf16.msra.mxu0 %v454_v3  ;;  %446 = vmatpush3.bf16.msra.mxu1 %v454_v3 }
  0x10   :  { %411 = vmatprep.subr.bf16.mxu0 %v455_v6  ;;  %439 = vmatprep.subr.bf16.mxu1 %v455_v6 }
  0x13   :  { %412 = vmatpush3.bf16.msra.mxu0 %v455_v6  ;;  %447 = vmatpush3.bf16.msra.mxu1 %v455_v6 }
  0x14   :  { %413 = vmatprep.subr.bf16.mxu0 %v456_v7  ;;  %440 = vmatprep.subr.bf16.mxu1 %v456_v7 }
  0x17   :  { %414 = vmatpush3.bf16.msra.mxu0 %v456_v7  ;;  %448 = vmatpush3.bf16.msra.mxu1 %v456_v7 }
  0x18   :  { %415 = vmatprep.subr.bf16.mxu0 %v457_v8  ;;  %441 = vmatprep.subr.bf16.mxu1 %v457_v8 }
  0x1b   :  { %416 = vmatpush3.bf16.msra.mxu0 %v457_v8  ;;  %449 = vmatpush3.bf16.msra.mxu1 %v457_v8 }
  0x1c   :  { %417 = vmatprep.subr.bf16.mxu0 %v458_v9  ;;  %442 = vmatprep.subr.bf16.mxu1 %v458_v9 }
  0x1f   :  { %418 = vmatpush3.bf16.msra.mxu0 %v458_v9  ;;  %450 = vmatpush3.bf16.msra.mxu1 %v458_v9 }
  0x22   :  { %420 = vmatmul.mubr.bf16.vlgmr.msra.gmra.mrb[0].mxu0 %v461_v10  ;;  %428 = vmatmul.mubr.bf16.vlgmr.msra.gmra.mrb[0].mxu1 %v462_v11 }
  0x23   :  { %423 = vmatprep.mubr.bf16.mxu0 %v463_v12  ;;  %431 = vmatprep.mubr.bf16.mxu1 %v464_v13 }
  0x2a   :  { %424 = vmatmul.mubr.bf16.gmra.mrb[4].mxu0 %v465_v14  ;;  %432 = vmatmul.mubr.bf16.gmra.mrb[4].mxu1 %v466_v15 }
  0xf5   :  { %v421_v17 = vpop.f32.mrb[0].mxu0  ;;  %v429_v18 = vpop.f32.mrb[0].mxu1 }
  0xf6   :  { %v336_v19 = vadd.f32 %v421_v17, %v386_v16  ;;  %v344_v20 = vadd.f32 %v429_v18, %v386_v16  ;;  %v213_v21 = vpop.f32.mrb[1].mxu0  ;;  %v245_v22 = vpop.f32.mrb[1].mxu1 }
  0xf7   :  { %v334_v23 = vadd.f32 %v386_v16, %v213_v21  ;;  %v342_v24 = vadd.f32 %v386_v16, %v245_v22  ;;  %v422_v25 = vpop.f32.mrb[2].mxu0  ;;  %v430_v26 = vpop.f32.mrb[2].mxu1 }
  0xf8   :  { %352 = vst [vmem:[%s589_s3 + $0x10] sm:$0xff] %v336_v19  ;;  %360 = vst [vmem:[%s589_s3 + $0x50] sm:$0xff] %v344_v20  ;;  %v337_v27 = vadd.f32 %v422_v25, %v386_v16  ;;  %v345_v28 = vadd.f32 %v430_v26, %v386_v16  ;;  %v216_v29 = vpop.f32.mrb[3].mxu0  ;;  %v248_v30 = vpop.f32.mrb[3].mxu1 }
  0xf9   :  { %350 = vst [vmem:[%s589_s3] sm:$0xff] %v334_v23  ;;  %358 = vst [vmem:[%s589_s3 + $0x40] sm:$0xff] %v342_v24  ;;  %v335_v31 = vadd.f32 %v386_v16, %v216_v29  ;;  %v343_v32 = vadd.f32 %v386_v16, %v248_v30 }
  0xfa   :  { %353 = vst [vmem:[%s589_s3 + $0x18] sm:$0xff] %v337_v27  ;;  %361 = vst [vmem:[%s589_s3 + $0x58] sm:$0xff] %v345_v28 }
  0xfb   :  { %351 = vst [vmem:[%s589_s3 + $0x8] sm:$0xff] %v335_v31  ;;  %359 = vst [vmem:[%s589_s3 + $0x48] sm:$0xff] %v343_v32 }
  0xfd   :  { %v425_v33 = vpop.f32.mrb[4].mxu0  ;;  %v433_v34 = vpop.f32.mrb[4].mxu1 }
  0xfe   :  { %v340_v35 = vadd.f32 %v425_v33, %v386_v16  ;;  %v348_v36 = vadd.f32 %v433_v34, %v386_v16  ;;  %v229_v37 = vpop.f32.mrb[5].mxu0  ;;  %v261_v38 = vpop.f32.mrb[5].mxu1 }
  0xff   :  { %v338_v39 = vadd.f32 %v386_v16, %v229_v37  ;;  %v346_v40 = vadd.f32 %v386_v16, %v261_v38  ;;  %v426_v41 = vpop.f32.mrb[6].mxu0  ;;  %v434_v42 = vpop.f32.mrb[6].mxu1 }
 0x100   :  { %356 = vst [vmem:[%s589_s3 + $0x30] sm:$0xff] %v340_v35  ;;  %364 = vst [vmem:[%s589_s3 + $0x70] sm:$0xff] %v348_v36  ;;  %v341_v43 = vadd.f32 %v426_v41, %v386_v16  ;;  %v349_v44 = vadd.f32 %v434_v42, %v386_v16  ;;  %v232_v45 = vpop.f32.mrb[7].mxu0  ;;  %v264_v46 = vpop.f32.mrb[7].mxu1 }
 0x101   :  { %354 = vst [vmem:[%s589_s3 + $0x20] sm:$0xff] %v338_v39  ;;  %362 = vst [vmem:[%s589_s3 + $0x60] sm:$0xff] %v346_v40  ;;  %v339_v47 = vadd.f32 %v386_v16, %v232_v45  ;;  %v347_v48 = vadd.f32 %v386_v16, %v264_v46 }
 0x102   :  { %357 = vst [vmem:[%s589_s3 + $0x38] sm:$0xff] %v341_v43  ;;  %365 = vst [vmem:[%s589_s3 + $0x78] sm:$0xff] %v349_v44 }
 0x103   :  { %355 = vst [vmem:[%s589_s3 + $0x28] sm:$0xff] %v339_v47  ;;  %363 = vst [vmem:[%s589_s3 + $0x68] sm:$0xff] %v347_v48 }

// kernel: vanilla_vae_forward.47
= control target key start
LH: loop header
LB: loop body
LE: loop exit
PB: predicated region body
PF: predicated region fallthrough
CT: control target
= control target key end

     0   :  { %11 = vsyncpa [#allocation4], 0  ;;  %s242_s0 = inlined_call_operand.vmem [shape: f32[16,128], index: 0, kind: input, shape index: {}]   ;;  %s243_s1 = inlined_call_operand.vmem [shape: f32[16,128], index: 1, kind: input, shape index: {}]   ;;  %s244_s2 = inlined_call_operand.vmem [shape: f32[2,16], index: 2, kind: input, shape index: {}]   ;;  %s245_s3 = inlined_call_operand.vmem [shape: f32[2,16], index: 3, kind: input, shape index: {}]   ;;  %s246_s4 = inlined_call_operand.hbm [shape: f32[1,1], index: 4, kind: output, shape index: {0}]   ;;  %s247_s5 = inlined_call_operand.hbm [shape: f32[1,1], index: 5, kind: output, shape index: {1}]  }
   0x1   :  { %v27_v0 = vld [vmem:[%s242_s0] sm:$0xff]  ;;  %v28_v1 = vld [vmem:[%s242_s0 + $0x8] sm:$0xff] }
   0x2   :  { %v29_v2 = vld [vmem:[%s243_s1] sm:$0xff]  ;;  %v30_v3 = vld [vmem:[%s243_s1 + $0x8] sm:$0xff] }
   0x3   :  { %v31_v4 = vsub.f32 %v27_v0, %v29_v2  ;;  %v56_v5 = vld [vmem:[%s245_s3] sm:$0x3]  ;;  %v32_v6 = vsub.f32 %v28_v1, %v30_v3 }
   0x4   :  { %v58_v7 = vmul.f32 1.442695, %v56_v5 }
   0x5   :  { %12 = vsyncpa [#allocation6], 0  ;;  %v34_v8 = vmul.f32 %v31_v4, %v31_v4  ;;  %v35_v9 = vmul.f32 %v32_v6, %v32_v6  ;;  %v55_v11 = vld [vmem:[%s244_s2] sm:$0x3]  ;;  %vm63_vm0 = vcmask 123904   ;;  %vm25_vm1 = vcmask 0  }
   0x6   :  { %113 = vpow2.f32 %v58_v7  ;;  %v57_v12 = vmul.f32 %v55_v11, %v55_v11  ;;  %v163_v18 = vmov 0.0   ;;  %s164_s2 = smov [#allocation3]   ;;  %s165_s29 = smov [#allocation5]  }
   0x7   :  { %v36_v10 = vadd.f32 %v35_v9, %v34_v8  ;;  %26 = vst.msk [vmem:[#allocation2] sm:$0x1] %vm25_vm1, %v163_v18  ;;  %s83_s3 = sshll.u32 %s164_s2, 4  ;;  %s93_s30 = sshll.u32 %s165_s29, 4  ;;  %s84_s3 = int_to_ptr.vmem [resolvable:$true] %s83_s3  ;;  %s94_s30 = int_to_ptr.vmem [resolvable:$true] %s93_s30 }
   0x8   :  { %s115_s6 = scalar_lea.vmem %s84_s3, 16  ;;  %s119_s7 = scalar_lea.vmem %s84_s3, 32 }
   0x9   :  { %37 = vadd.xlane.f32.xlu0 %v36_v10  ;;  %p116_p0 = scmp.ne.s32.totalorder %s84_s3, %s115_s6  ;;  %p120_p1 = scmp.lt.s32.totalorder %s84_s3, %s84_s3 }
   0xa   :  { %p121_p2 = scmp.lt.s32.totalorder %s119_s7, %s115_s6 }
   0xc   :  { %p122_p3 = por %p121_p2, %p120_p1 }
   0xe   :  { %v33_v33 = vld [vmem:[#allocation2] sm:$0x1]  ;;  %p123_p4 = pnand %p122_p3, %p116_p0 }
  0x10   :  { %v114_v13 = vpop.eup %113 }
  0x11   :  { %v60_v14 = vadd.f32 %v114_v13, %v57_v12 }
  0x13   :  { %v105_v15 = vadd.f32 -1.0, %v60_v14 }
  0x15   :  { %v62_v16 = vsub.f32 %v105_v15, %v56_v5 }
  0x17   :  { %v64_v17 = vsel %vm63_vm0, %v62_v16, 0.0 }
  0x18   :  { %65 = vadd.xlane.f32.xlu0 %v64_v17 }
  0x96   :  { %v38_v19 = vpop.xlane.xlu0 %37 }
  0x97   :  { %v39_v20 = vrot.slane %v38_v19, 4 }
  0x99   :  { %v40_v21 = vadd.f32 %v39_v20, %v38_v19 }
  0x9b   :  { %v41_v22 = vrot.slane %v40_v21, 2 }
  0x9d   :  { %v42_v23 = vadd.f32 %v41_v22, %v40_v21 }
  0x9f   :  { %v43_v24 = vrot.slane %v42_v23, 1 }
  0xa1   :  { %v44_v25 = vadd.f32 %v43_v24, %v42_v23 }
  0xa3   :  { %106 = vpush %v44_v25 }
  0xa5   :  { %v66_v26 = vpop.xlane.xlu0 %65 }
  0xa6   :  { %v67_v27 = vrot.slane %v66_v26, 4 }
  0xa8   :  { %v68_v28 = vadd.f32 %v67_v27, %v66_v26 }
  0xaa   :  { %v69_v29 = vrot.slane %v68_v28, 2 }
  0xac   :  { %v70_v30 = vadd.f32 %v69_v29, %v68_v28 }
  0xae   :  { %v71_v31 = vrot.slane %v70_v30, 1 }
  0xb0   :  { %v72_v32 = vadd.f32 %v71_v31, %v70_v30 }
  0xb2   :  { %108 = vpush %v72_v32 }
  0xd4   :  { %s107_s1 = spop %106 }
  0xd5   :  { %v46_v34 = vstv %s107_s1 }
  0xd6   :  { %v47_v35 = vadd.f32 %v46_v34, %v33_v33 }
  0xd8   :  { %49 = vst.msk [vmem:[#allocation2] sm:$0x1] %vm25_vm1, %v47_v35 }
  0xdf   :  { %v53_v36 = vld [vmem:[#allocation2] sm:$0x1] }
  0xe0   :  { %54 = vst.msk [vmem:[#allocation3] sm:$0x1] %vm25_vm1, %v53_v36 }
  0xe1   :  { %126 = shalt.err (!%p123_p4)
}
  0xe2   :  { %s127_s10 = scalar_lea.hbm %s246_s4, 16 }
  0xe3   :  { %p128_p5 = scmp.ne.s32.totalorder %s246_s4, %s127_s10  ;;  %p131_p6 = scmp.lt.u32.totalorder %s127_s10, %s246_s4 }
  0xe5   :  { %p133_p7 = pnand %p131_p6, %p128_p5 }
  0xe7   :  { %136 = shalt.err (!%p133_p7)
}
  0xe8   :  { %86 = dma.vmem_to_hbm [thread:$0]  %s84_s3, 16, %s246_s4, [#allocation4]  }
  0xe9   :  { %s109_s17 = spop %108  ;;  %s137_s18 = scalar_lea.vmem %s94_s30, 16 }
  0xea   :  { %v74_v37 = vstv %s109_s17  ;;  %p138_p8 = scmp.ne.s32.totalorder %s94_s30, %s137_s18  ;;  %s141_s19 = scalar_lea.vmem %s94_s30, 32 }
  0xeb   :  { %v75_v38 = vmul.f32 0.5, %v74_v37  ;;  %p142_p9 = scmp.lt.s32.totalorder %s94_s30, %s94_s30  ;;  %p143_p10 = scmp.lt.s32.totalorder %s141_s19, %s137_s18 }
  0xed   :  { %76 = vst.msk [vmem:[#allocation5] sm:$0x1] %vm25_vm1, %v75_v38  ;;  %p144_p11 = por %p143_p10, %p142_p9 }
  0xef   :  { %p145_p12 = pnand %p144_p11, %p138_p8 }
  0xf1   :  { %148 = shalt.err (!%p145_p12)
}
  0xf2   :  { %s149_s22 = scalar_lea.hbm %s247_s5, 16 }
  0xf3   :  { %p150_p13 = scmp.ne.s32.totalorder %s247_s5, %s149_s22  ;;  %p153_p0 = scmp.lt.u32.totalorder %s149_s22, %s247_s5 }
  0xf5   :  { %p155_p1 = pnand %p153_p0, %p150_p13 }
  0xf7   :  { %158 = shalt.err (!%p155_p1)
}
  0xf8   :  { %96 = dma.vmem_to_hbm [thread:$0]  %s94_s30, 16, %s247_s5, [#allocation6]  }
  0xf9   :  { %159 = dma.done.wait [#allocation4], 16  }
  0xfa   :  { %160 = vsyncadd [#allocation4], 4294967280 }
  0xfb   :  { %161 = dma.done.wait [#allocation6], 16  }
  0xfc   :  { %162 = vsyncadd [#allocation6], 4294967280 }
  0xfd   :  { %103 = vsyncpa [#allocation4], 1 }
  0xfe   :  { %104 = vsyncpa [#allocation6], 1 }

</bundles_post_ra>
